<compile_context>
chip_gen: v7x
topology: tpu7x:2x2x1
jax: 0.10.0
libtpu: 0.0.40
codegen_flags: <defaults>
</compile_context>

<pallas_src>
import jax
import jax.numpy as jnp
import numpy as np
from jax.experimental import pallas as pl
from jax.experimental.pallas import tpu as pltpu

HIDDEN_UNITS = [100, 20, 20, 20]
N_Z = 5

_LANE = 128
_OUT_CHUNK = 2048                 # lane chunk for the decoder-head store
_SINGLE_BUFFER_BYTES = 2 << 20    # weights >= 2 MiB get Buffered(1)


def _softplus(z):
    # matches torch.nn.Softplus(beta=1, threshold=20)
    return jnp.where(z > 20.0, z, jnp.log1p(jnp.exp(jnp.minimum(z, 20.0))))


def _layer_dims(space_dim, hidden_units, n_z):
    enc = [space_dim] + list(hidden_units) + [n_z]
    dec = [n_z] + list(hidden_units[::-1]) + [space_dim]
    dims = list(zip(enc[:-1], enc[1:])) + list(zip(dec[:-1], dec[1:]))
    n_layers = len(hidden_units)
    acts = [True] * len(dims)
    acts[n_layers] = False   # encoder head (no softplus)
    acts[-1] = False         # decoder head (no softplus)
    return dims, acts


def _round_up(x, m):
    return ((x + m - 1) // m) * m


def _pad_dim(d):
    # Lane-align the wide feature dims; leave the tiny (<=32) widths alone.
    return _round_up(d, _LANE) if d >= 64 else d


def _vmem_capacity_bytes():
    try:
        return int(pltpu.get_tpu_info().vmem_capacity_bytes)
    except Exception:
        return 64 << 20  # conservative: v7x per-TensorCore budget


def _choose_tile(b, d_pad, vmem_capacity, max_batch_tile=None):
    """Largest batch tile that fits comfortably in per-core VMEM, with small
    batch-padding waste and (best effort) an even grid count for megacore."""
    big_vmem = vmem_capacity >= (100 << 20)      # v5e/v6e 128 MiB vs v7x 64 MiB
    if d_pad >= 4096:
        max_tile = 256 if big_vmem else 128
    elif d_pad >= 2048:
        max_tile = 512 if big_vmem else 256
    else:
        max_tile = 512
    if max_batch_tile is not None:
        max_tile = max(8, min(max_tile, _round_up(max_batch_tile, 8)))
    b8 = _round_up(b, 8)
    if b8 <= max_tile:
        return b8                                 # single grid step
    candidates = [t for t in (512, 256, 128, 64, 32, 16, 8) if t <= max_tile]
    for t in candidates:                          # largest tile, <= ~12.5% waste
        if (_round_up(b, t) - b) * 8 <= b:
            tile = t
            break
    else:
        tile = min(candidates, key=lambda t: _round_up(b, t) - b)
    n_steps = _round_up(b, tile) // tile
    if n_steps > 1 and n_steps % 2 == 1 and tile >= 16:
        tile //= 2                                # nudge toward an even grid
    return tile


def _vmem_limit_bytes(tile, dims_pad, params_pad, io_itemsize, out_chunk):
    d_in = dims_pad[0][0]
    d_out = dims_pad[-1][1]
    io = 2 * tile * d_in * io_itemsize + 2 * tile * d_out * io_itemsize
    wsum = 0
    for w, b in params_pad:
        wbytes = w.size * w.dtype.itemsize
        nbuf = 1 if wbytes >= _SINGLE_BUFFER_BYTES else 2
        wsum += nbuf * wbytes + 2 * b.size * b.dtype.itemsize
    temps = tile * (out_chunk + 4 * _LANE) * 4    # chunk temp + small hiddens
    est = io + wsum + temps
    return int(min(max(int(est * 1.5) + (8 << 20), 32 << 20), 100 << 20))


def _make_ae_kernel(num_layers, act_flags, out_chunk):
    assert not act_flags[-1]

    def kernel(x_ref, *refs):
        out_ref = refs[-1]
        param_refs = refs[:-1]
        h = x_ref[...]
        # All layers except the decoder head use a full-width temp (narrow).
        for i in range(num_layers - 1):
            w = param_refs[2 * i][...]
            b = param_refs[2 * i + 1][...]
            z = jnp.dot(h.astype(w.dtype), w,
                        preferred_element_type=jnp.float32)
            z = z + b.astype(jnp.float32)
            h = _softplus(z) if act_flags[i] else z
        # Decoder head: chunk over the wide output dim and store each chunk
        # straight into out_ref -- no (tile, D_out) f32 temp is materialized,
        # and stores of earlier chunks overlap MXU work on later ones.
        w_ref = param_refs[2 * (num_layers - 1)]
        b_ref = param_refs[2 * (num_layers - 1) + 1]
        h = h.astype(w_ref.dtype)
        d_out = out_ref.shape[-1]
        for start in range(0, d_out, out_chunk):
            end = min(start + out_chunk, d_out)
            z = jnp.dot(h, w_ref[:, start:end],
                        preferred_element_type=jnp.float32)
            z = z + b_ref[:, start:end].astype(jnp.float32)
            out_ref[:, start:end] = z.astype(out_ref.dtype)

    return kernel


def init_autoencoder_params(key, space_dim, hidden_units, n_z):
    dims, _ = _layer_dims(space_dim, hidden_units, n_z)
    params = []
    for fan_in, fan_out in dims:
        key, kw, kb = jax.random.split(key, 3)
        bound = 1.0 / np.sqrt(fan_in)   # PyTorch nn.Linear default init bound
        w = jax.random.uniform(kw, (fan_in, fan_out), jnp.float32, -bound, bound)
        b = jax.random.uniform(kb, (1, fan_out), jnp.float32, -bound, bound)
        params.append((w, b))
    return params


def _pad_params(params, dims, dims_pad):
    padded = []
    for (w, b), (fi, fo), (fi_p, fo_p) in zip(params, dims, dims_pad):
        w_p = jnp.pad(w, ((0, fi_p - fi), (0, fo_p - fo)))
        b_p = jnp.pad(b, ((0, 0), (0, fo_p - fo)))
        padded.append((w_p, b_p))
    return padded


def autoencoder_forward(x, params, space_dim, hidden_units, n_z,
                        use_bf16_io=False, max_batch_tile=None):
    """Fused Autoencoder forward. x: (B, space_dim) float32.

    use_bf16_io=True is an explicit accuracy trade-off: x, the output and the
    two wide weights move in bf16 (f32 accumulation); the result is bf16.
    max_batch_tile is a correctness-testing hook only, not for benchmarking.
    """
    dims, act_flags = _layer_dims(space_dim, hidden_units, n_z)
    num_layers = len(dims)
    B, D = x.shape
    assert D == space_dim

    dims_pad = [(_pad_dim(fi), _pad_dim(fo)) for fi, fo in dims]
    d_in_pad = dims_pad[0][0]
    d_out_pad = dims_pad[-1][1]
    params_pad = _pad_params(params, dims, dims_pad)

    io_dtype = jnp.bfloat16 if use_bf16_io else x.dtype
    if use_bf16_io:
        w0, b0 = params_pad[0]
        wl, bl = params_pad[-1]
        params_pad[0] = (w0.astype(jnp.bfloat16), b0)
        params_pad[-1] = (wl.astype(jnp.bfloat16), bl)

    vmem_cap = _vmem_capacity_bytes()
    tile = _choose_tile(B, max(d_in_pad, d_out_pad), vmem_cap, max_batch_tile)
    b_pad = _round_up(B, tile)
    out_chunk = min(_OUT_CHUNK, d_out_pad)

    x_pad = jnp.pad(x, ((0, b_pad - B), (0, d_in_pad - D))).astype(io_dtype)

    flat_params = []
    in_specs = [pl.BlockSpec((tile, d_in_pad), lambda i: (i, 0))]
    for w, b in params_pad:
        flat_params += [w, b]
        if w.size * w.dtype.itemsize >= _SINGLE_BUFFER_BYTES:
            # Constant-index resident weight: single-buffer so the two big
            # matrices don't cost 2x VMEM (index_map never changes).
            w_spec = pl.BlockSpec(w.shape, lambda i: (0, 0),
                                  pipeline_mode=pl.Buffered(1))
        else:
            w_spec = pl.BlockSpec(w.shape, lambda i: (0, 0))
        in_specs.append(w_spec)
        in_specs.append(pl.BlockSpec(b.shape, lambda i: (0, 0)))

    vmem_limit = _vmem_limit_bytes(tile, dims_pad, params_pad,
                                   jnp.dtype(io_dtype).itemsize, out_chunk)

    out = pl.pallas_call(
        _make_ae_kernel(num_layers, act_flags, out_chunk),
        out_shape=jax.ShapeDtypeStruct((b_pad, d_out_pad), io_dtype),
        grid=(b_pad // tile,),
        in_specs=in_specs,
        out_specs=pl.BlockSpec((tile, d_out_pad), lambda i: (i, 0)),
        compiler_params=pltpu.CompilerParams(
            dimension_semantics=("parallel",),
            vmem_limit_bytes=vmem_limit,
        ),
    )(x_pad, *flat_params)
    return out[:B, :space_dim]


def autoencoder_reference(x, params, space_dim, hidden_units, n_z):
    _, act_flags = _layer_dims(space_dim, hidden_units, n_z)
    h = x.astype(jnp.float32)
    for (w, b), act in zip(params, act_flags):
        h = h @ w + b
        if act:
            h = _softplus(h)
    return h.astype(x.dtype)


if __name__ == "__main__":
    key = jax.random.PRNGKey(0)

    # Demo configuration: hidden_units / n_z from the module, space_dim shrunk
    # from 7200 -> 720 to keep the script small; the wrapper logic is the same
    # one that sizes the production space_dim=7200 case per chip generation.
    space_dim = 720
    batch = 4

    k_params, k_x, k_x2, k_p2, k_x3 = jax.random.split(key, 5)
    params = init_autoencoder_params(k_params, space_dim, HIDDEN_UNITS, N_Z)

    # Case 1: small batch, f32, single grid step -- strict correctness.
    x = jax.random.normal(k_x, (batch, space_dim), dtype=jnp.float32)
    out = jax.block_until_ready(
        autoencoder_forward(x, params, space_dim, HIDDEN_UNITS, N_Z))
    ref = autoencoder_reference(x, params, space_dim, HIDDEN_UNITS, N_Z)
    np.testing.assert_allclose(np.asarray(out), np.asarray(ref),
                               rtol=1e-5, atol=1e-5)
    assert out.shape == (batch, space_dim)

    # Case 2: multi-step batch grid. Correctness-only: an 8-row tile wastes
    # the MXU's M dimension and is dominated by per-step overhead -- never
    # use this configuration for benchmarking.
    x2 = jax.random.normal(k_x2, (20, space_dim), dtype=jnp.float32)
    out2 = jax.block_until_ready(
        autoencoder_forward(x2, params, space_dim, HIDDEN_UNITS, N_Z,
                            max_batch_tile=8))
    ref2 = autoencoder_reference(x2, params, space_dim, HIDDEN_UNITS, N_Z)
    np.testing.assert_allclose(np.asarray(out2), np.asarray(ref2),
                               rtol=1e-5, atol=1e-5)
    assert out2.shape == (20, space_dim)

    # Case 3: opt-in bf16 I/O on the two wide layers (relaxed tolerance;
    # this path intentionally trades accuracy for HBM bandwidth / MXU rate).
    out3 = jax.block_until_ready(
        autoencoder_forward(x, params, space_dim, HIDDEN_UNITS, N_Z,
                            use_bf16_io=True))
    assert out3.dtype == jnp.bfloat16
    out3_f32 = np.asarray(jnp.asarray(out3, dtype=jnp.float32))
    np.testing.assert_allclose(out3_f32, np.asarray(ref),
                               rtol=5e-2, atol=5e-2)

    # Case 4: space_dim above the lane-chunk threshold exercises the chunked
    # decoder-head store path (still small enough to run quickly).
    space_dim2 = 2304
    params2 = init_autoencoder_params(k_p2, space_dim2, HIDDEN_UNITS, N_Z)
    x3 = jax.random.normal(k_x3, (8, space_dim2), dtype=jnp.float32)
    out4 = jax.block_until_ready(
        autoencoder_forward(x3, params2, space_dim2, HIDDEN_UNITS, N_Z))
    ref4 = autoencoder_reference(x3, params2, space_dim2, HIDDEN_UNITS, N_Z)
    np.testing.assert_allclose(np.asarray(out4), np.asarray(ref4),
                               rtol=1e-4, atol=1e-4)
    assert out4.shape == (8, space_dim2)

    print("KERNEL_OK")
</pallas_src>

<mosaic_0001>
module attributes {stable_mosaic.version = 11 : i64} {
  func.func @kernel(%arg0: i32, %arg1: memref<8x768xf32, #tpu.memory_space<vmem>>, %arg2: memref<768x128xf32, #tpu.memory_space<vmem>>, %arg3: memref<1x128xf32, #tpu.memory_space<vmem>>, %arg4: memref<128x20xf32, #tpu.memory_space<vmem>>, %arg5: memref<1x20xf32, #tpu.memory_space<vmem>>, %arg6: memref<20x20xf32, #tpu.memory_space<vmem>>, %arg7: memref<1x20xf32, #tpu.memory_space<vmem>>, %arg8: memref<20x20xf32, #tpu.memory_space<vmem>>, %arg9: memref<1x20xf32, #tpu.memory_space<vmem>>, %arg10: memref<20x5xf32, #tpu.memory_space<vmem>>, %arg11: memref<1x5xf32, #tpu.memory_space<vmem>>, %arg12: memref<5x20xf32, #tpu.memory_space<vmem>>, %arg13: memref<1x20xf32, #tpu.memory_space<vmem>>, %arg14: memref<20x20xf32, #tpu.memory_space<vmem>>, %arg15: memref<1x20xf32, #tpu.memory_space<vmem>>, %arg16: memref<20x20xf32, #tpu.memory_space<vmem>>, %arg17: memref<1x20xf32, #tpu.memory_space<vmem>>, %arg18: memref<20x128xf32, #tpu.memory_space<vmem>>, %arg19: memref<1x128xf32, #tpu.memory_space<vmem>>, %arg20: memref<128x768xf32, #tpu.memory_space<vmem>>, %arg21: memref<1x768xf32, #tpu.memory_space<vmem>>, %arg22: memref<8x768xf32, #tpu.memory_space<vmem>>) attributes {dimension_semantics = [#tpu.dimension_semantics<parallel>], iteration_bounds = array<i64: 1>, scalar_prefetch = 0 : i64, scratch_operands = 0 : i64, tpu.core_type = #tpu.core_type<tc>, window_params = [{transform_indices = @transform_0, window_bounds = array<i64: 8, 768>}, {pipeline_mode = #tpu.pipeline_mode<synchronous>, transform_indices = @transform_1, window_bounds = array<i64: 768, 128>}, {pipeline_mode = #tpu.pipeline_mode<synchronous>, transform_indices = @transform_2, window_bounds = array<i64: 1, 128>}, {pipeline_mode = #tpu.pipeline_mode<synchronous>, transform_indices = @transform_3, window_bounds = array<i64: 128, 20>}, {pipeline_mode = #tpu.pipeline_mode<synchronous>, transform_indices = @transform_4, window_bounds = array<i64: 1, 20>}, {pipeline_mode = #tpu.pipeline_mode<synchronous>, transform_indices = @transform_5, window_bounds = array<i64: 20, 20>}, {pipeline_mode = #tpu.pipeline_mode<synchronous>, transform_indices = @transform_6, window_bounds = array<i64: 1, 20>}, {pipeline_mode = #tpu.pipeline_mode<synchronous>, transform_indices = @transform_7, window_bounds = array<i64: 20, 20>}, {pipeline_mode = #tpu.pipeline_mode<synchronous>, transform_indices = @transform_8, window_bounds = array<i64: 1, 20>}, {pipeline_mode = #tpu.pipeline_mode<synchronous>, transform_indices = @transform_9, window_bounds = array<i64: 20, 5>}, {pipeline_mode = #tpu.pipeline_mode<synchronous>, transform_indices = @transform_10, window_bounds = array<i64: 1, 5>}, {pipeline_mode = #tpu.pipeline_mode<synchronous>, transform_indices = @transform_11, window_bounds = array<i64: 5, 20>}, {pipeline_mode = #tpu.pipeline_mode<synchronous>, transform_indices = @transform_12, window_bounds = array<i64: 1, 20>}, {pipeline_mode = #tpu.pipeline_mode<synchronous>, transform_indices = @transform_13, window_bounds = array<i64: 20, 20>}, {pipeline_mode = #tpu.pipeline_mode<synchronous>, transform_indices = @transform_14, window_bounds = array<i64: 1, 20>}, {pipeline_mode = #tpu.pipeline_mode<synchronous>, transform_indices = @transform_15, window_bounds = array<i64: 20, 20>}, {pipeline_mode = #tpu.pipeline_mode<synchronous>, transform_indices = @transform_16, window_bounds = array<i64: 1, 20>}, {pipeline_mode = #tpu.pipeline_mode<synchronous>, transform_indices = @transform_17, window_bounds = array<i64: 20, 128>}, {pipeline_mode = #tpu.pipeline_mode<synchronous>, transform_indices = @transform_18, window_bounds = array<i64: 1, 128>}, {pipeline_mode = #tpu.pipeline_mode<synchronous>, transform_indices = @transform_19, window_bounds = array<i64: 128, 768>}, {pipeline_mode = #tpu.pipeline_mode<synchronous>, transform_indices = @transform_20, window_bounds = array<i64: 1, 768>}, {transform_indices = @transform_21, window_bounds = array<i64: 8, 768>}]} {
    %c0 = arith.constant 0 : index
    %c0_0 = arith.constant 0 : index
    %0 = vector.load %arg1[%c0, %c0_0] : memref<8x768xf32, #tpu.memory_space<vmem>>, vector<8x768xf32>
    %c0_1 = arith.constant 0 : index
    %c0_2 = arith.constant 0 : index
    %1 = vector.load %arg2[%c0_1, %c0_2] : memref<768x128xf32, #tpu.memory_space<vmem>>, vector<768x128xf32>
    %c0_3 = arith.constant 0 : index
    %c0_4 = arith.constant 0 : index
    %2 = vector.load %arg3[%c0_3, %c0_4] : memref<1x128xf32, #tpu.memory_space<vmem>>, vector<1x128xf32>
    %cst = arith.constant dense<0.000000e+00> : vector<8x128xf32>
    %3 = tpu.matmul %0, %1, %cst {dimension_numbers = #tpu.dot_dimension_numbers<[1], [0], [0], [1], [0, 0, 1, 1], [], []>} : vector<8x768xf32>, vector<768x128xf32>, vector<8x128xf32> -> vector<8x128xf32>
    %4 = vector.broadcast %2 : vector<1x128xf32> to vector<8x128xf32>
    %5 = arith.addf %3, %4 : vector<8x128xf32>
    %cst_5 = arith.constant 2.000000e+01 : f32
    %6 = vector.broadcast %cst_5 : f32 to vector<8x128xf32>
    %7 = arith.cmpf ogt, %5, %6 : vector<8x128xf32>
    %cst_6 = arith.constant 2.000000e+01 : f32
    %8 = vector.broadcast %cst_6 : f32 to vector<8x128xf32>
    %9 = arith.minimumf %5, %8 : vector<8x128xf32>
    %10 = math.exp %9 : vector<8x128xf32>
    %11 = math.log1p %10 : vector<8x128xf32>
    %12 = arith.select %7, %5, %11 : vector<8x128xi1>, vector<8x128xf32>
    %c0_7 = arith.constant 0 : index
    %c0_8 = arith.constant 0 : index
    %13 = vector.load %arg4[%c0_7, %c0_8] : memref<128x20xf32, #tpu.memory_space<vmem>>, vector<128x20xf32>
    %c0_9 = arith.constant 0 : index
    %c0_10 = arith.constant 0 : index
    %14 = vector.load %arg5[%c0_9, %c0_10] : memref<1x20xf32, #tpu.memory_space<vmem>>, vector<1x20xf32>
    %cst_11 = arith.constant dense<0.000000e+00> : vector<8x20xf32>
    %15 = tpu.matmul %12, %13, %cst_11 {dimension_numbers = #tpu.dot_dimension_numbers<[1], [0], [0], [1], [0, 0, 1, 1], [], []>} : vector<8x128xf32>, vector<128x20xf32>, vector<8x20xf32> -> vector<8x20xf32>
    %16 = vector.broadcast %14 : vector<1x20xf32> to vector<8x20xf32>
    %17 = arith.addf %15, %16 : vector<8x20xf32>
    %cst_12 = arith.constant 2.000000e+01 : f32
    %18 = vector.broadcast %cst_12 : f32 to vector<8x20xf32>
    %19 = arith.cmpf ogt, %17, %18 : vector<8x20xf32>
    %cst_13 = arith.constant 2.000000e+01 : f32
    %20 = vector.broadcast %cst_13 : f32 to vector<8x20xf32>
    %21 = arith.minimumf %17, %20 : vector<8x20xf32>
    %22 = math.exp %21 : vector<8x20xf32>
    %23 = math.log1p %22 : vector<8x20xf32>
    %24 = arith.select %19, %17, %23 : vector<8x20xi1>, vector<8x20xf32>
    %c0_14 = arith.constant 0 : index
    %c0_15 = arith.constant 0 : index
    %25 = vector.load %arg6[%c0_14, %c0_15] : memref<20x20xf32, #tpu.memory_space<vmem>>, vector<20x20xf32>
    %c0_16 = arith.constant 0 : index
    %c0_17 = arith.constant 0 : index
    %26 = vector.load %arg7[%c0_16, %c0_17] : memref<1x20xf32, #tpu.memory_space<vmem>>, vector<1x20xf32>
    %cst_18 = arith.constant dense<0.000000e+00> : vector<8x20xf32>
    %27 = tpu.matmul %24, %25, %cst_18 {dimension_numbers = #tpu.dot_dimension_numbers<[1], [0], [0], [1], [0, 0, 1, 1], [], []>} : vector<8x20xf32>, vector<20x20xf32>, vector<8x20xf32> -> vector<8x20xf32>
    %28 = vector.broadcast %26 : vector<1x20xf32> to vector<8x20xf32>
    %29 = arith.addf %27, %28 : vector<8x20xf32>
    %cst_19 = arith.constant 2.000000e+01 : f32
    %30 = vector.broadcast %cst_19 : f32 to vector<8x20xf32>
    %31 = arith.cmpf ogt, %29, %30 : vector<8x20xf32>
    %cst_20 = arith.constant 2.000000e+01 : f32
    %32 = vector.broadcast %cst_20 : f32 to vector<8x20xf32>
    %33 = arith.minimumf %29, %32 : vector<8x20xf32>
    %34 = math.exp %33 : vector<8x20xf32>
    %35 = math.log1p %34 : vector<8x20xf32>
    %36 = arith.select %31, %29, %35 : vector<8x20xi1>, vector<8x20xf32>
    %c0_21 = arith.constant 0 : index
    %c0_22 = arith.constant 0 : index
    %37 = vector.load %arg8[%c0_21, %c0_22] : memref<20x20xf32, #tpu.memory_space<vmem>>, vector<20x20xf32>
    %c0_23 = arith.constant 0 : index
    %c0_24 = arith.constant 0 : index
    %38 = vector.load %arg9[%c0_23, %c0_24] : memref<1x20xf32, #tpu.memory_space<vmem>>, vector<1x20xf32>
    %cst_25 = arith.constant dense<0.000000e+00> : vector<8x20xf32>
    %39 = tpu.matmul %36, %37, %cst_25 {dimension_numbers = #tpu.dot_dimension_numbers<[1], [0], [0], [1], [0, 0, 1, 1], [], []>} : vector<8x20xf32>, vector<20x20xf32>, vector<8x20xf32> -> vector<8x20xf32>
    %40 = vector.broadcast %38 : vector<1x20xf32> to vector<8x20xf32>
    %41 = arith.addf %39, %40 : vector<8x20xf32>
    %cst_26 = arith.constant 2.000000e+01 : f32
    %42 = vector.broadcast %cst_26 : f32 to vector<8x20xf32>
    %43 = arith.cmpf ogt, %41, %42 : vector<8x20xf32>
    %cst_27 = arith.constant 2.000000e+01 : f32
    %44 = vector.broadcast %cst_27 : f32 to vector<8x20xf32>
    %45 = arith.minimumf %41, %44 : vector<8x20xf32>
    %46 = math.exp %45 : vector<8x20xf32>
    %47 = math.log1p %46 : vector<8x20xf32>
    %48 = arith.select %43, %41, %47 : vector<8x20xi1>, vector<8x20xf32>
    %c0_28 = arith.constant 0 : index
    %c0_29 = arith.constant 0 : index
    %49 = vector.load %arg10[%c0_28, %c0_29] : memref<20x5xf32, #tpu.memory_space<vmem>>, vector<20x5xf32>
    %c0_30 = arith.constant 0 : index
    %c0_31 = arith.constant 0 : index
    %50 = vector.load %arg11[%c0_30, %c0_31] : memref<1x5xf32, #tpu.memory_space<vmem>>, vector<1x5xf32>
    %cst_32 = arith.constant dense<0.000000e+00> : vector<8x5xf32>
    %51 = tpu.matmul %48, %49, %cst_32 {dimension_numbers = #tpu.dot_dimension_numbers<[1], [0], [0], [1], [0, 0, 1, 1], [], []>} : vector<8x20xf32>, vector<20x5xf32>, vector<8x5xf32> -> vector<8x5xf32>
    %52 = vector.broadcast %50 : vector<1x5xf32> to vector<8x5xf32>
    %53 = arith.addf %51, %52 : vector<8x5xf32>
    %c0_33 = arith.constant 0 : index
    %c0_34 = arith.constant 0 : index
    %54 = vector.load %arg12[%c0_33, %c0_34] : memref<5x20xf32, #tpu.memory_space<vmem>>, vector<5x20xf32>
    %c0_35 = arith.constant 0 : index
    %c0_36 = arith.constant 0 : index
    %55 = vector.load %arg13[%c0_35, %c0_36] : memref<1x20xf32, #tpu.memory_space<vmem>>, vector<1x20xf32>
    %cst_37 = arith.constant dense<0.000000e+00> : vector<8x20xf32>
    %56 = tpu.matmul %53, %54, %cst_37 {dimension_numbers = #tpu.dot_dimension_numbers<[1], [0], [0], [1], [0, 0, 1, 1], [], []>} : vector<8x5xf32>, vector<5x20xf32>, vector<8x20xf32> -> vector<8x20xf32>
    %57 = vector.broadcast %55 : vector<1x20xf32> to vector<8x20xf32>
    %58 = arith.addf %56, %57 : vector<8x20xf32>
    %cst_38 = arith.constant 2.000000e+01 : f32
    %59 = vector.broadcast %cst_38 : f32 to vector<8x20xf32>
    %60 = arith.cmpf ogt, %58, %59 : vector<8x20xf32>
    %cst_39 = arith.constant 2.000000e+01 : f32
    %61 = vector.broadcast %cst_39 : f32 to vector<8x20xf32>
    %62 = arith.minimumf %58, %61 : vector<8x20xf32>
    %63 = math.exp %62 : vector<8x20xf32>
    %64 = math.log1p %63 : vector<8x20xf32>
    %65 = arith.select %60, %58, %64 : vector<8x20xi1>, vector<8x20xf32>
    %c0_40 = arith.constant 0 : index
    %c0_41 = arith.constant 0 : index
    %66 = vector.load %arg14[%c0_40, %c0_41] : memref<20x20xf32, #tpu.memory_space<vmem>>, vector<20x20xf32>
    %c0_42 = arith.constant 0 : index
    %c0_43 = arith.constant 0 : index
    %67 = vector.load %arg15[%c0_42, %c0_43] : memref<1x20xf32, #tpu.memory_space<vmem>>, vector<1x20xf32>
    %cst_44 = arith.constant dense<0.000000e+00> : vector<8x20xf32>
    %68 = tpu.matmul %65, %66, %cst_44 {dimension_numbers = #tpu.dot_dimension_numbers<[1], [0], [0], [1], [0, 0, 1, 1], [], []>} : vector<8x20xf32>, vector<20x20xf32>, vector<8x20xf32> -> vector<8x20xf32>
    %69 = vector.broadcast %67 : vector<1x20xf32> to vector<8x20xf32>
    %70 = arith.addf %68, %69 : vector<8x20xf32>
    %cst_45 = arith.constant 2.000000e+01 : f32
    %71 = vector.broadcast %cst_45 : f32 to vector<8x20xf32>
    %72 = arith.cmpf ogt, %70, %71 : vector<8x20xf32>
    %cst_46 = arith.constant 2.000000e+01 : f32
    %73 = vector.broadcast %cst_46 : f32 to vector<8x20xf32>
    %74 = arith.minimumf %70, %73 : vector<8x20xf32>
    %75 = math.exp %74 : vector<8x20xf32>
    %76 = math.log1p %75 : vector<8x20xf32>
    %77 = arith.select %72, %70, %76 : vector<8x20xi1>, vector<8x20xf32>
    %c0_47 = arith.constant 0 : index
    %c0_48 = arith.constant 0 : index
    %78 = vector.load %arg16[%c0_47, %c0_48] : memref<20x20xf32, #tpu.memory_space<vmem>>, vector<20x20xf32>
    %c0_49 = arith.constant 0 : index
    %c0_50 = arith.constant 0 : index
    %79 = vector.load %arg17[%c0_49, %c0_50] : memref<1x20xf32, #tpu.memory_space<vmem>>, vector<1x20xf32>
    %cst_51 = arith.constant dense<0.000000e+00> : vector<8x20xf32>
    %80 = tpu.matmul %77, %78, %cst_51 {dimension_numbers = #tpu.dot_dimension_numbers<[1], [0], [0], [1], [0, 0, 1, 1], [], []>} : vector<8x20xf32>, vector<20x20xf32>, vector<8x20xf32> -> vector<8x20xf32>
    %81 = vector.broadcast %79 : vector<1x20xf32> to vector<8x20xf32>
    %82 = arith.addf %80, %81 : vector<8x20xf32>
    %cst_52 = arith.constant 2.000000e+01 : f32
    %83 = vector.broadcast %cst_52 : f32 to vector<8x20xf32>
    %84 = arith.cmpf ogt, %82, %83 : vector<8x20xf32>
    %cst_53 = arith.constant 2.000000e+01 : f32
    %85 = vector.broadcast %cst_53 : f32 to vector<8x20xf32>
    %86 = arith.minimumf %82, %85 : vector<8x20xf32>
    %87 = math.exp %86 : vector<8x20xf32>
    %88 = math.log1p %87 : vector<8x20xf32>
    %89 = arith.select %84, %82, %88 : vector<8x20xi1>, vector<8x20xf32>
    %c0_54 = arith.constant 0 : index
    %c0_55 = arith.constant 0 : index
    %90 = vector.load %arg18[%c0_54, %c0_55] : memref<20x128xf32, #tpu.memory_space<vmem>>, vector<20x128xf32>
    %c0_56 = arith.constant 0 : index
    %c0_57 = arith.constant 0 : index
    %91 = vector.load %arg19[%c0_56, %c0_57] : memref<1x128xf32, #tpu.memory_space<vmem>>, vector<1x128xf32>
    %cst_58 = arith.constant dense<0.000000e+00> : vector<8x128xf32>
    %92 = tpu.matmul %89, %90, %cst_58 {dimension_numbers = #tpu.dot_dimension_numbers<[1], [0], [0], [1], [0, 0, 1, 1], [], []>} : vector<8x20xf32>, vector<20x128xf32>, vector<8x128xf32> -> vector<8x128xf32>
    %93 = vector.broadcast %91 : vector<1x128xf32> to vector<8x128xf32>
    %94 = arith.addf %92, %93 : vector<8x128xf32>
    %cst_59 = arith.constant 2.000000e+01 : f32
    %95 = vector.broadcast %cst_59 : f32 to vector<8x128xf32>
    %96 = arith.cmpf ogt, %94, %95 : vector<8x128xf32>
    %cst_60 = arith.constant 2.000000e+01 : f32
    %97 = vector.broadcast %cst_60 : f32 to vector<8x128xf32>
    %98 = arith.minimumf %94, %97 : vector<8x128xf32>
    %99 = math.exp %98 : vector<8x128xf32>
    %100 = math.log1p %99 : vector<8x128xf32>
    %101 = arith.select %96, %94, %100 : vector<8x128xi1>, vector<8x128xf32>
    %c0_61 = arith.constant 0 : index
    %c0_62 = arith.constant 0 : index
    %102 = vector.load %arg20[%c0_61, %c0_62] : memref<128x768xf32, #tpu.memory_space<vmem>>, vector<128x768xf32>
    %cst_63 = arith.constant dense<0.000000e+00> : vector<8x768xf32>
    %103 = tpu.matmul %101, %102, %cst_63 {dimension_numbers = #tpu.dot_dimension_numbers<[1], [0], [0], [1], [0, 0, 1, 1], [], []>} : vector<8x128xf32>, vector<128x768xf32>, vector<8x768xf32> -> vector<8x768xf32>
    %c0_64 = arith.constant 0 : index
    %c0_65 = arith.constant 0 : index
    %104 = vector.load %arg21[%c0_64, %c0_65] : memref<1x768xf32, #tpu.memory_space<vmem>>, vector<1x768xf32>
    %105 = vector.broadcast %104 : vector<1x768xf32> to vector<8x768xf32>
    %106 = arith.addf %103, %105 : vector<8x768xf32>
    %c0_66 = arith.constant 0 : index
    %c0_67 = arith.constant 0 : index
    %107 = vector.load %arg22[%c0_66, %c0_67] : memref<8x768xf32, #tpu.memory_space<vmem>>, vector<8x768xf32>
    tpu.vector_store %arg22[%c0_66, %c0_67], %106 {strides = array<i32>} : memref<8x768xf32, #tpu.memory_space<vmem>>, vector<8x768xf32>,
    return
  }
  func.func @transform_0(%arg0: i32) -> (i32, i32) {
    %c0_i32 = arith.constant 0 : i32
    %c0_i32_0 = arith.constant 0 : i32
    return %arg0, %c0_i32 : i32, i32
  }
  func.func @transform_1(%arg0: i32) -> (i32, i32) {
    %c0_i32 = arith.constant 0 : i32
    %c0_i32_0 = arith.constant 0 : i32
    %c0_i32_1 = arith.constant 0 : i32
    return %c0_i32, %c0_i32_0 : i32, i32
  }
  func.func @transform_2(%arg0: i32) -> (i32, i32) {
    %c0_i32 = arith.constant 0 : i32
    %c0_i32_0 = arith.constant 0 : i32
    %c0_i32_1 = arith.constant 0 : i32
    return %c0_i32, %c0_i32_0 : i32, i32
  }
  func.func @transform_3(%arg0: i32) -> (i32, i32) {
    %c0_i32 = arith.constant 0 : i32
    %c0_i32_0 = arith.constant 0 : i32
    %c0_i32_1 = arith.constant 0 : i32
    return %c0_i32, %c0_i32_0 : i32, i32
  }
  func.func @transform_4(%arg0: i32) -> (i32, i32) {
    %c0_i32 = arith.constant 0 : i32
    %c0_i32_0 = arith.constant 0 : i32
    %c0_i32_1 = arith.constant 0 : i32
    return %c0_i32, %c0_i32_0 : i32, i32
  }
  func.func @transform_5(%arg0: i32) -> (i32, i32) {
    %c0_i32 = arith.constant 0 : i32
    %c0_i32_0 = arith.constant 0 : i32
    %c0_i32_1 = arith.constant 0 : i32
    return %c0_i32, %c0_i32_0 : i32, i32
  }
  func.func @transform_6(%arg0: i32) -> (i32, i32) {
    %c0_i32 = arith.constant 0 : i32
    %c0_i32_0 = arith.constant 0 : i32
    %c0_i32_1 = arith.constant 0 : i32
    return %c0_i32, %c0_i32_0 : i32, i32
  }
  func.func @transform_7(%arg0: i32) -> (i32, i32) {
    %c0_i32 = arith.constant 0 : i32
    %c0_i32_0 = arith.constant 0 : i32
    %c0_i32_1 = arith.constant 0 : i32
    return %c0_i32, %c0_i32_0 : i32, i32
  }
  func.func @transform_8(%arg0: i32) -> (i32, i32) {
    %c0_i32 = arith.constant 0 : i32
    %c0_i32_0 = arith.constant 0 : i32
    %c0_i32_1 = arith.constant 0 : i32
    return %c0_i32, %c0_i32_0 : i32, i32
  }
  func.func @transform_9(%arg0: i32) -> (i32, i32) {
    %c0_i32 = arith.constant 0 : i32
    %c0_i32_0 = arith.constant 0 : i32
    %c0_i32_1 = arith.constant 0 : i32
    return %c0_i32, %c0_i32_0 : i32, i32
  }
  func.func @transform_10(%arg0: i32) -> (i32, i32) {
    %c0_i32 = arith.constant 0 : i32
    %c0_i32_0 = arith.constant 0 : i32
    %c0_i32_1 = arith.constant 0 : i32
    return %c0_i32, %c0_i32_0 : i32, i32
  }
  func.func @transform_11(%arg0: i32) -> (i32, i32) {
    %c0_i32 = arith.constant 0 : i32
    %c0_i32_0 = arith.constant 0 : i32
    %c0_i32_1 = arith.constant 0 : i32
    return %c0_i32, %c0_i32_0 : i32, i32
  }
  func.func @transform_12(%arg0: i32) -> (i32, i32) {
    %c0_i32 = arith.constant 0 : i32
    %c0_i32_0 = arith.constant 0 : i32
    %c0_i32_1 = arith.constant 0 : i32
    return %c0_i32, %c0_i32_0 : i32, i32
  }
  func.func @transform_13(%arg0: i32) -> (i32, i32) {
    %c0_i32 = arith.constant 0 : i32
    %c0_i32_0 = arith.constant 0 : i32
    %c0_i32_1 = arith.constant 0 : i32
    return %c0_i32, %c0_i32_0 : i32, i32
  }
  func.func @transform_14(%arg0: i32) -> (i32, i32) {
    %c0_i32 = arith.constant 0 : i32
    %c0_i32_0 = arith.constant 0 : i32
    %c0_i32_1 = arith.constant 0 : i32
    return %c0_i32, %c0_i32_0 : i32, i32
  }
  func.func @transform_15(%arg0: i32) -> (i32, i32) {
    %c0_i32 = arith.constant 0 : i32
    %c0_i32_0 = arith.constant 0 : i32
    %c0_i32_1 = arith.constant 0 : i32
    return %c0_i32, %c0_i32_0 : i32, i32
  }
  func.func @transform_16(%arg0: i32) -> (i32, i32) {
    %c0_i32 = arith.constant 0 : i32
    %c0_i32_0 = arith.constant 0 : i32
    %c0_i32_1 = arith.constant 0 : i32
    return %c0_i32, %c0_i32_0 : i32, i32
  }
  func.func @transform_17(%arg0: i32) -> (i32, i32) {
    %c0_i32 = arith.constant 0 : i32
    %c0_i32_0 = arith.constant 0 : i32
    %c0_i32_1 = arith.constant 0 : i32
    return %c0_i32, %c0_i32_0 : i32, i32
  }
  func.func @transform_18(%arg0: i32) -> (i32, i32) {
    %c0_i32 = arith.constant 0 : i32
    %c0_i32_0 = arith.constant 0 : i32
    %c0_i32_1 = arith.constant 0 : i32
    return %c0_i32, %c0_i32_0 : i32, i32
  }
  func.func @transform_19(%arg0: i32) -> (i32, i32) {
    %c0_i32 = arith.constant 0 : i32
    %c0_i32_0 = arith.constant 0 : i32
    %c0_i32_1 = arith.constant 0 : i32
    return %c0_i32, %c0_i32_0 : i32, i32
  }
  func.func @transform_20(%arg0: i32) -> (i32, i32) {
    %c0_i32 = arith.constant 0 : i32
    %c0_i32_0 = arith.constant 0 : i32
    %c0_i32_1 = arith.constant 0 : i32
    return %c0_i32, %c0_i32_0 : i32, i32
  }
  func.func @transform_21(%arg0: i32) -> (i32, i32) {
    %c0_i32 = arith.constant 0 : i32
    %c0_i32_0 = arith.constant 0 : i32
    return %arg0, %c0_i32 : i32, i32
  }
}

</mosaic_0001>

<bundles_post_ra>
// kernel: tpu_custom_call.1
= control target key start
LH: loop header
LB: loop body
LE: loop exit
PB: predicated region body
PF: predicated region fallthrough
CT: control target
= control target key end

     0   :  { %s2746_s0 = inlined_call_operand.vmem [shape: f32[8,768], index: 0, kind: input, shape index: {}]   ;;  %s2747_s1 = inlined_call_operand.hbm [shape: f32[768,128], index: 1, kind: input, shape index: {}]   ;;  %s2748_s2 = inlined_call_operand.hbm [shape: f32[1,128], index: 2, kind: input, shape index: {}]   ;;  %s2749_s3 = inlined_call_operand.vmem [shape: f32[128,20], index: 3, kind: input, shape index: {}]   ;;  %s2750_s4 = inlined_call_operand.hbm [shape: f32[1,20], index: 4, kind: input, shape index: {}]   ;;  %s2751_s5 = inlined_call_operand.vmem [shape: f32[20,20], index: 5, kind: input, shape index: {}]   ;;  %s2752_s6 = inlined_call_operand.hbm [shape: f32[1,20], index: 6, kind: input, shape index: {}]   ;;  %s2753_s7 = inlined_call_operand.vmem [shape: f32[20,20], index: 7, kind: input, shape index: {}]   ;;  %s2754_s8 = inlined_call_operand.hbm [shape: f32[1,20], index: 8, kind: input, shape index: {}]   ;;  %s2755_s9 = inlined_call_operand.vmem [shape: f32[20,5], index: 9, kind: input, shape index: {}]   ;;  %s2756_s10 = inlined_call_operand.vmem [shape: f32[1,5], index: 10, kind: input, shape index: {}]   ;;  %s2757_s11 = inlined_call_operand.vmem [shape: f32[5,20], index: 11, kind: input, shape index: {}]   ;;  %s2758_s12 = inlined_call_operand.vmem [shape: f32[1,20], index: 12, kind: input, shape index: {}]   ;;  %s2759_s13 = inlined_call_operand.vmem [shape: f32[20,20], index: 13, kind: input, shape index: {}]   ;;  %s2760_s14 = inlined_call_operand.vmem [shape: f32[1,20], index: 14, kind: input, shape index: {}]   ;;  %s2761_s15 = inlined_call_operand.vmem [shape: f32[20,20], index: 15, kind: input, shape index: {}]   ;;  %s2762_s16 = inlined_call_operand.vmem [shape: f32[1,20], index: 16, kind: input, shape index: {}]   ;;  %s2763_s17 = inlined_call_operand.vmem [shape: f32[20,128], index: 17, kind: input, shape index: {}]   ;;  %s2764_s18 = inlined_call_operand.vmem [shape: f32[1,128], index: 18, kind: input, shape index: {}]   ;;  %s2765_s19 = inlined_call_operand.hbm [shape: f32[128,768], index: 19, kind: input, shape index: {}]   ;;  %s2766_s20 = inlined_call_operand.vmem [shape: f32[1,768], index: 20, kind: input, shape index: {}]   ;;  %s2767_s21 = inlined_call_operand.hbm [shape: f32[8,768], index: 21, kind: output, shape index: {}]  }
   0x1   :  { %2775 = sst [smem:[#allocation19_spill]] %s2746_s0 }
   0x2   :  { %2776 = sst [smem:[#allocation20_spill]] %s2747_s1 }
   0x3   :  { %2777 = sst [smem:[#allocation21_spill]] %s2748_s2 }
   0x4   :  { %2778 = sst [smem:[#allocation22_spill]] %s2749_s3 }
   0x5   :  { %2779 = sst [smem:[#allocation23_spill]] %s2750_s4 }
   0x6   :  { %2780 = sst [smem:[#allocation24_spill]] %s2751_s5 }
   0x7   :  { %2781 = sst [smem:[#allocation25_spill]] %s2766_s20 }
   0x8   :  { %2782 = sst [smem:[#allocation26_spill]] %s2767_s21 }
   0x9   :  { %26 = vsyncpa [#allocation3], 0 }
   0xa   :  { %27 = vsyncpa [#allocation6], 0 }
   0xb   :  { %28 = vsyncpa [#allocation9], 0 }
   0xc   :  { %29 = vsyncpa [#allocation12], 0 }
   0xd   :  { %30 = vsyncpa [#allocation4], 0  ;;  %s2345_s2 = smov [#allocation5]   ;;  %s2346_s26 = smov [#allocation8]  }
   0xe   :  { %s51_s25 = sshll.u32 %s2345_s2, 4  ;;  %s75_s27 = sshll.u32 %s2346_s26, 4  ;;  %s52_s25 = int_to_ptr.vmem [resolvable:$true] %s51_s25  ;;  %s76_s27 = int_to_ptr.vmem [resolvable:$true] %s75_s27 }
   0xf   :  { %s2783_s29 = sld [smem:[#allocation21_spill]] }
  0x15   :  { %s2181_s0 = scalar_lea.hbm %s2783_s29, 16 }
  0x16   :  { %p2182_p0 = scmp.ne.s32.totalorder %s2783_s29, %s2181_s0  ;;  %p2185_p1 = scmp.lt.u32.totalorder %s2181_s0, %s2783_s29 }
  0x18   :  { %p2187_p2 = pnand %p2185_p1, %p2182_p0 }
  0x1a   :  { %2190 = shalt.err (!%p2187_p2)
}
  0x1b   :  { %s2191_s23 = scalar_lea.vmem %s52_s25, 16  ;;  %s2195_s1 = scalar_lea.vmem %s52_s25, 32 }
  0x1c   :  { %p2192_p3 = scmp.ne.s32.totalorder %s52_s25, %s2191_s23  ;;  %p2196_p4 = scmp.lt.s32.totalorder %s52_s25, %s52_s25 }
  0x1d   :  { %p2197_p5 = scmp.lt.s32.totalorder %s2195_s1, %s2191_s23 }
  0x1f   :  { %p2198_p6 = por %p2197_p5, %p2196_p4 }
  0x21   :  { %p2199_p7 = pnand %p2198_p6, %p2192_p3 }
  0x23   :  { %2202 = shalt.err (!%p2199_p7)
}
  0x24   :  { %54 = dma.hbm_to_vmem [thread:$0]  %s2783_s29, 16, %s52_s25, [#allocation6]  }
  0x25   :  { %s2203_s28 = scalar_lea.hbm %s2752_s6, 16 }
  0x26   :  { %p2204_p8 = scmp.ne.s32.totalorder %s2752_s6, %s2203_s28  ;;  %p2207_p9 = scmp.lt.u32.totalorder %s2203_s28, %s2752_s6 }
  0x28   :  { %p2209_p10 = pnand %p2207_p9, %p2204_p8 }
  0x2a   :  { %2212 = shalt.err (!%p2209_p10)
}
  0x2b   :  { %s2213_s22 = scalar_lea.vmem %s76_s27, 16  ;;  %s2217_s23 = scalar_lea.vmem %s76_s27, 32 }
  0x2c   :  { %p2214_p11 = scmp.ne.s32.totalorder %s76_s27, %s2213_s22  ;;  %p2218_p12 = scmp.lt.s32.totalorder %s76_s27, %s76_s27 }
  0x2d   :  { %p2219_p13 = scmp.lt.s32.totalorder %s2217_s23, %s2213_s22 }
  0x2f   :  { %p2220_p0 = por %p2219_p13, %p2218_p12 }
  0x31   :  { %p2221_p1 = pnand %p2220_p0, %p2214_p11 }
  0x33   :  { %2224 = shalt.err (!%p2221_p1)
}
  0x34   :  { %78 = dma.hbm_to_vmem [thread:$0]  %s2752_s6, 16, %s76_s27, [#allocation9]  }
  0x35   :  { %s2347_s1 = smov [#allocation2]   ;;  %s2784_s3 = sld [smem:[#allocation20_spill]] }
  0x36   :  { %s38_s24 = sshll.u32 %s2347_s1, 4  ;;  %s39_s24 = int_to_ptr.vmem [resolvable:$true] %s38_s24 }
  0x3b   :  { %s2225_s28 = scalar_lea.hbm %s2784_s3, 12288 }
  0x3c   :  { %p2226_p2 = scmp.ne.s32.totalorder %s2784_s3, %s2225_s28  ;;  %p2229_p3 = scmp.lt.u32.totalorder %s2225_s28, %s2784_s3 }
  0x3e   :  { %p2231_p4 = pnand %p2229_p3, %p2226_p2 }
  0x40   :  { %2234 = shalt.err (!%p2231_p4)
}
  0x41   :  { %s2235_s22 = scalar_lea.vmem %s39_s24, 12288  ;;  %p2240_p6 = scmp.lt.s32.totalorder %s39_s24, %s39_s24 }
  0x42   :  { %p2236_p5 = scmp.ne.s32.totalorder %s39_s24, %s2235_s22  ;;  %p2241_p7 = scmp.lt.s32.totalorder %s2235_s22, %s2235_s22 }
  0x44   :  { %p2242_p8 = por %p2241_p7, %p2240_p6 }
  0x46   :  { %p2243_p9 = pnand %p2242_p8, %p2236_p5 }
  0x48   :  { %2246 = shalt.err (!%p2243_p9)
}
  0x49   :  { %s2348_s6 = smov 128   ;;  %s2349_s27 = smov 8  }
  0x4a   :  { %44 = dma.hbm_to_vmem [thread:$0]  %s2784_s3, 12288, %s39_s24, [#allocation3], %s2348_s6, %s2348_s6, %s2349_s27  }
  0x4b   :  { %s2350_s29 = smov [#allocation7]   ;;  %s2351_s2 = smov [#allocation10]  }
  0x4c   :  { %s63_s1 = sshll.u32 %s2350_s29, 4  ;;  %s87_s26 = sshll.u32 %s2351_s2, 4  ;;  %s64_s1 = int_to_ptr.vmem [resolvable:$true] %s63_s1  ;;  %s88_s26 = int_to_ptr.vmem [resolvable:$true] %s87_s26 }
  0x4d   :  { %s2785_s0 = sld [smem:[#allocation23_spill]] }
  0x53   :  { %s2247_s30 = scalar_lea.hbm %s2785_s0, 16 }
  0x54   :  { %p2248_p10 = scmp.ne.s32.totalorder %s2785_s0, %s2247_s30  ;;  %p2251_p11 = scmp.lt.u32.totalorder %s2247_s30, %s2785_s0 }
  0x56   :  { %p2253_p12 = pnand %p2251_p11, %p2248_p10 }
  0x58   :  { %2256 = shalt.err (!%p2253_p12)
}
  0x59   :  { %s2257_s24 = scalar_lea.vmem %s64_s1, 16  ;;  %s2261_s3 = scalar_lea.vmem %s64_s1, 32 }
  0x5a   :  { %p2258_p13 = scmp.ne.s32.totalorder %s64_s1, %s2257_s24  ;;  %p2262_p0 = scmp.lt.s32.totalorder %s64_s1, %s64_s1 }
  0x5b   :  { %p2263_p1 = scmp.lt.s32.totalorder %s2261_s3, %s2257_s24 }
  0x5d   :  { %p2264_p2 = por %p2263_p1, %p2262_p0 }
  0x5f   :  { %p2265_p3 = pnand %p2264_p2, %p2258_p13 }
  0x61   :  { %2268 = shalt.err (!%p2265_p3)
}
  0x62   :  { %66 = dma.hbm_to_vmem [thread:$0]  %s2785_s0, 16, %s64_s1, [#allocation6]  }
  0x63   :  { %s2269_s20 = scalar_lea.hbm %s2754_s8, 16 }
  0x64   :  { %p2270_p4 = scmp.ne.s32.totalorder %s2754_s8, %s2269_s20  ;;  %p2273_p5 = scmp.lt.u32.totalorder %s2269_s20, %s2754_s8 }
  0x66   :  { %p2275_p6 = pnand %p2273_p5, %p2270_p4 }
  0x68   :  { %2278 = shalt.err (!%p2275_p6)
}
  0x69   :  { %s2279_s4 = scalar_lea.vmem %s88_s26, 16  ;;  %s2283_s30 = scalar_lea.vmem %s88_s26, 32 }
  0x6a   :  { %p2280_p7 = scmp.ne.s32.totalorder %s88_s26, %s2279_s4  ;;  %p2284_p8 = scmp.lt.s32.totalorder %s88_s26, %s88_s26 }
  0x6b   :  { %p2285_p9 = scmp.lt.s32.totalorder %s2283_s30, %s2279_s4 }
  0x6d   :  { %p2286_p10 = por %p2285_p9, %p2284_p8 }
  0x6f   :  { %p2287_p11 = pnand %p2286_p10, %p2280_p7 }
  0x71   :  { %2290 = shalt.err (!%p2287_p11)
}
  0x72   :  { %90 = dma.hbm_to_vmem [thread:$0]  %s2754_s8, 16, %s88_s26, [#allocation9]  }
  0x73   :  { %s2352_s5 = smov [#allocation11]   ;;  %s2291_s6 = scalar_lea.hbm %s2765_s19, 12288 }
  0x74   :  { %s116_s22 = sshll.u32 %s2352_s5, 4  ;;  %p2292_p12 = scmp.ne.s32.totalorder %s2765_s19, %s2291_s6  ;;  %s117_s22 = int_to_ptr.vmem [resolvable:$true] %s116_s22 }
  0x75   :  { %p2295_p13 = scmp.lt.u32.totalorder %s2291_s6, %s2765_s19 }
  0x77   :  { %p2297_p0 = pnand %p2295_p13, %p2292_p12 }
  0x79   :  { %2300 = shalt.err (!%p2297_p0)
}
  0x7a   :  { %s2301_s21 = scalar_lea.vmem %s117_s22, 12288  ;;  %p2306_p2 = scmp.lt.s32.totalorder %s117_s22, %s117_s22 }
  0x7b   :  { %p2302_p1 = scmp.ne.s32.totalorder %s117_s22, %s2301_s21  ;;  %p2307_p3 = scmp.lt.s32.totalorder %s2301_s21, %s2301_s21 }
  0x7d   :  { %p2308_p4 = por %p2307_p3, %p2306_p2 }
  0x7f   :  { %p2309_p5 = pnand %p2308_p4, %p2302_p1 }
  0x81   :  { %2312 = shalt.err (!%p2309_p5)
}
  0x82   :  { %s2353_s8 = smov 768   ;;  %s2354_s26 = smov 48  }
  0x83   :  { %122 = dma.hbm_to_vmem [thread:$0]  %s2765_s19, 12288, %s117_s22, [#allocation12], %s2353_s8, %s2353_s8, %s2354_s26  }
  0x84   :  { %2335 = dma.done.wait [#allocation3], 12288  }
  0x85   :  { %2336 = vsyncadd [#allocation3], 4294955008 }
  0x86   :  { %2337 = dma.done.wait [#allocation6], 32  }
  0x87   :  { %2338 = vsyncadd [#allocation6], 4294967264 }
  0x88   :  { %2339 = dma.done.wait [#allocation9], 32  }
  0x89   :  { %2340 = vsyncadd [#allocation9], 4294967264 }
  0x8a   :  { %2341 = dma.done.wait [#allocation12], 12288  }
  0x8b   :  { %2342 = vsyncadd [#allocation12], 4294955008  ;;  %v165_v0 = vld [vmem:[#allocation2 + $0x80] sm:$0xff]  ;;  %v166_v1 = vld [vmem:[#allocation2 + $0x88] sm:$0xff]  ;;  %s2786_s4 = sld [smem:[#allocation19_spill]]  ;;  %s2787_s21 = sld [smem:[#allocation22_spill]] }
  0x8c   :  { %v149_v2 = vld [vmem:[#allocation2] sm:$0xff]  ;;  %v1901_v3 = vpack.c.bf16 %v166_v1, %v165_v0  ;;  %v150_v4 = vld [vmem:[#allocation2 + $0x8] sm:$0xff]  ;;  %v167_v11 = vld [vmem:[#allocation2 + $0x90] sm:$0xff]  ;;  %vm2356_vm0 = vmmov 0   ;;  %s2788_s24 = sld [smem:[#allocation24_spill]]  ;;  %vm597_vm3 = vcmask 1043456  }
  0x8d   :  { %v197_v5 = vld [vmem:[#allocation2 + $0x180] sm:$0xff]  ;;  %v198_v6 = vld [vmem:[#allocation2 + $0x188] sm:$0xff]  ;;  %v1903_v7 = vpack.c.bf16 %v150_v4, %v149_v2  ;;  %v168_v13 = vld [vmem:[#allocation2 + $0x98] sm:$0xff]  ;;  %vm593_vm5 = vcmask 162816   ;;  %vm883_vm11 = vcmask 1044480   ;;  %vm879_vm12 = vcmask 39936  }
  0x8e   :  { %v1933_v8 = vpack.c.bf16 %v198_v6, %v197_v5  ;;  %v181_v9 = vld [vmem:[#allocation2 + $0x100] sm:$0xff]  ;;  %v182_v10 = vld [vmem:[#allocation2 + $0x108] sm:$0xff]  ;;  %1902 = vmatprep.subr.bf16.mxu0 %v1901_v3  ;;  %v151_v14 = vld [vmem:[#allocation2 + $0x10] sm:$0xff]  ;;  %v1905_v16 = vpack.c.bf16 %v168_v13, %v167_v11  ;;  %s2789_s0 = sld [smem:[#allocation25_spill]]  ;;  %s2358_s5 = smov [#allocation13]  }
  0x8f   :  { %v1935_v12 = vpack.c.bf16 %v182_v10, %v181_v9  ;;  %v152_v15 = vld [vmem:[#allocation2 + $0x18] sm:$0xff]  ;;  %1904 = vmatpush3.bf16.msra.mxu0 %v1903_v7  ;;  %v199_v18 = vld [vmem:[#allocation2 + $0x190] sm:$0xff]  ;;  %v169_v23 = vld [vmem:[#allocation2 + $0xa0] sm:$0xff] }
  0x90   :  { %1934 = vmatprep.subr.bf16.mxu1 %v1933_v8  ;;  %v1907_v17 = vpack.c.bf16 %v152_v15, %v151_v14  ;;  %v200_v19 = vld [vmem:[#allocation2 + $0x198] sm:$0xff]  ;;  %v183_v20 = vld [vmem:[#allocation2 + $0x110] sm:$0xff]  ;;  %v170_v24 = vld [vmem:[#allocation2 + $0xa8] sm:$0xff]  ;;  %1906 = vmatprep.subr.bf16.mxu0 %v1905_v16 }
  0x91   :  { %1936 = vmatpush3.bf16.msra.mxu1 %v1935_v12  ;;  %v1937_v21 = vpack.c.bf16 %v200_v19, %v199_v18  ;;  %v184_v22 = vld [vmem:[#allocation2 + $0x118] sm:$0xff]  ;;  %v1909_v26 = vpack.c.bf16 %v170_v24, %v169_v23  ;;  %v153_v27 = vld [vmem:[#allocation2 + $0x20] sm:$0xff]  ;;  %v154_v28 = vld [vmem:[#allocation2 + $0x28] sm:$0xff] }
  0x92   :  { %v1939_v25 = vpack.c.bf16 %v184_v22, %v183_v20  ;;  %v201_v29 = vld [vmem:[#allocation2 + $0x1a0] sm:$0xff]  ;;  %v202_v30 = vld [vmem:[#allocation2 + $0x1a8] sm:$0xff]  ;;  %v1911_v33 = vpack.c.bf16 %v154_v28, %v153_v27  ;;  %v171_v35 = vld [vmem:[#allocation2 + $0xb0] sm:$0xff] }
  0x93   :  { %1938 = vmatprep.subr.bf16.mxu1 %v1937_v21  ;;  %v185_v31 = vld [vmem:[#allocation2 + $0x120] sm:$0xff]  ;;  %v186_v32 = vld [vmem:[#allocation2 + $0x128] sm:$0xff]  ;;  %1908 = vmatpush3.bf16.msra.mxu0 %v1907_v17  ;;  %v1941_v34 = vpack.c.bf16 %v202_v30, %v201_v29  ;;  %v172_v36 = vld [vmem:[#allocation2 + $0xb8] sm:$0xff] }
  0x94   :  { %v155_v37 = vld [vmem:[#allocation2 + $0x30] sm:$0xff]  ;;  %1910 = vmatprep.subr.bf16.mxu0 %v1909_v26  ;;  %v1943_v38 = vpack.c.bf16 %v186_v32, %v185_v31  ;;  %v1913_v39 = vpack.c.bf16 %v172_v36, %v171_v35  ;;  %v156_v40 = vld [vmem:[#allocation2 + $0x38] sm:$0xff]  ;;  %v173_v46 = vld [vmem:[#allocation2 + $0xc0] sm:$0xff] }
  0x95   :  { %1940 = vmatpush3.bf16.msra.mxu1 %v1939_v25  ;;  %v203_v41 = vld [vmem:[#allocation2 + $0x1b0] sm:$0xff]  ;;  %v204_v42 = vld [vmem:[#allocation2 + $0x1b8] sm:$0xff]  ;;  %v174_v47 = vld [vmem:[#allocation2 + $0xc8] sm:$0xff]  ;;  %v1915_v48 = vpack.c.bf16 %v156_v40, %v155_v37 }
  0x96   :  { %1942 = vmatprep.subr.bf16.mxu1 %v1941_v34  ;;  %v1945_v43 = vpack.c.bf16 %v204_v42, %v203_v41  ;;  %v187_v44 = vld [vmem:[#allocation2 + $0x130] sm:$0xff]  ;;  %v188_v45 = vld [vmem:[#allocation2 + $0x138] sm:$0xff]  ;;  %v205_v49 = vld [vmem:[#allocation2 + $0x1c0] sm:$0xff]  ;;  %v1917_v52 = vpack.c.bf16 %v174_v47, %v173_v46 }
  0x97   :  { %1912 = vmatpush3.bf16.msra.mxu0 %v1911_v33  ;;  %v206_v50 = vld [vmem:[#allocation2 + $0x1c8] sm:$0xff]  ;;  %v1947_v51 = vpack.c.bf16 %v188_v45, %v187_v44  ;;  %v157_v53 = vld [vmem:[#allocation2 + $0x40] sm:$0xff]  ;;  %v175_v58 = vld [vmem:[#allocation2 + $0xd0] sm:$0xff] }
  0x98   :  { %1914 = vmatprep.subr.bf16.mxu0 %v1913_v39  ;;  %v158_v54 = vld [vmem:[#allocation2 + $0x48] sm:$0xff]  ;;  %v189_v55 = vld [vmem:[#allocation2 + $0x140] sm:$0xff]  ;;  %v1949_v56 = vpack.c.bf16 %v206_v50, %v205_v49  ;;  %v176_v59 = vld [vmem:[#allocation2 + $0xd8] sm:$0xff] }
  0x99   :  { %1944 = vmatpush3.bf16.msra.mxu1 %v1943_v38  ;;  %v190_v57 = vld [vmem:[#allocation2 + $0x148] sm:$0xff]  ;;  %v207_v60 = vld [vmem:[#allocation2 + $0x1d0] sm:$0xff]  ;;  %v208_v61 = vld [vmem:[#allocation2 + $0x1d8] sm:$0xff]  ;;  %v1919_v62 = vpack.c.bf16 %v158_v54, %v157_v53  ;;  %v1921_v0 = vpack.c.bf16 %v176_v59, %v175_v58 }
  0x9a   :  { %1946 = vmatprep.subr.bf16.mxu1 %v1945_v43  ;;  %v1951_v63 = vpack.c.bf16 %v190_v57, %v189_v55  ;;  %v159_v1 = vld [vmem:[#allocation2 + $0x50] sm:$0xff]  ;;  %v160_v2 = vld [vmem:[#allocation2 + $0x58] sm:$0xff]  ;;  %v1953_v4 = vpack.c.bf16 %v208_v61, %v207_v60  ;;  %v177_v6 = vld [vmem:[#allocation2 + $0xe0] sm:$0xff] }
  0x9b   :  { %1916 = vmatpush3.bf16.msra.mxu0 %v1915_v48  ;;  %v191_v3 = vld [vmem:[#allocation2 + $0x150] sm:$0xff]  ;;  %v192_v5 = vld [vmem:[#allocation2 + $0x158] sm:$0xff]  ;;  %v178_v7 = vld [vmem:[#allocation2 + $0xe8] sm:$0xff]  ;;  %v1923_v10 = vpack.c.bf16 %v160_v2, %v159_v1 }
  0x9c   :  { %1918 = vmatprep.subr.bf16.mxu0 %v1917_v52  ;;  %v209_v8 = vld [vmem:[#allocation2 + $0x1e0] sm:$0xff]  ;;  %v210_v9 = vld [vmem:[#allocation2 + $0x1e8] sm:$0xff]  ;;  %v1955_v13 = vpack.c.bf16 %v192_v5, %v191_v3  ;;  %v1925_v14 = vpack.c.bf16 %v178_v7, %v177_v6  ;;  %v179_v19 = vld [vmem:[#allocation2 + $0xf0] sm:$0xff] }
  0x9d   :  { %1948 = vmatpush3.bf16.msra.mxu1 %v1947_v51  ;;  %v161_v11 = vld [vmem:[#allocation2 + $0x60] sm:$0xff]  ;;  %v144_v12 = vld [vmem:[%s2786_s4 + $0x8] sm:$0xff]  ;;  %v1957_v18 = vpack.c.bf16 %v210_v9, %v209_v8  ;;  %v180_v20 = vld [vmem:[#allocation2 + $0xf8] sm:$0xff] }
  0x9e   :  { %1950 = vmatprep.subr.bf16.mxu1 %v1949_v56  ;;  %v162_v15 = vld [vmem:[#allocation2 + $0x68] sm:$0xff]  ;;  %v193_v16 = vld [vmem:[#allocation2 + $0x160] sm:$0xff]  ;;  %316 = vmatprep.mubr.f32.mxu0 %v144_v12  ;;  %v146_v21 = vld [vmem:[%s2786_s4 + $0x18] sm:$0xff]  ;;  %v1929_v26 = vpack.c.bf16 %v180_v20, %v179_v19 }
  0x9f   :  { %1920 = vmatpush3.bf16.msra.mxu0 %v1919_v62  ;;  %v194_v17 = vld [vmem:[#allocation2 + $0x168] sm:$0xff]  ;;  %v211_v22 = vld [vmem:[#allocation2 + $0x1f0] sm:$0xff]  ;;  %v212_v23 = vld [vmem:[#allocation2 + $0x1f8] sm:$0xff]  ;;  %386 = vmatprep.mubr.f32.mxu1 %v146_v21  ;;  %v1927_v24 = vpack.c.bf16 %v162_v15, %v161_v11 }
  0xa0   :  { %1922 = vmatprep.subr.bf16.mxu0 %v1921_v0  ;;  %v1959_v25 = vpack.c.bf16 %v194_v17, %v193_v16  ;;  %v163_v27 = vld [vmem:[#allocation2 + $0x70] sm:$0xff]  ;;  %v164_v28 = vld [vmem:[#allocation2 + $0x78] sm:$0xff]  ;;  %v1961_v30 = vpack.c.bf16 %v212_v23, %v211_v22  ;;  %v229_v32 = vld [vmem:[#allocation2 + $0x280] sm:$0xff] }
  0xa1   :  { %1952 = vmatpush3.bf16.msra.mxu1 %v1951_v63  ;;  %v195_v29 = vld [vmem:[#allocation2 + $0x170] sm:$0xff]  ;;  %v196_v31 = vld [vmem:[#allocation2 + $0x178] sm:$0xff]  ;;  %v230_v33 = vld [vmem:[#allocation2 + $0x288] sm:$0xff]  ;;  %v1931_v34 = vpack.c.bf16 %v164_v28, %v163_v27 }
  0xa2   :  { %1954 = vmatprep.subr.bf16.mxu1 %v1953_v4  ;;  %v1963_v35 = vpack.c.bf16 %v196_v31, %v195_v29  ;;  %v1965_v36 = vpack.c.bf16 %v230_v33, %v229_v32  ;;  %v213_v37 = vld [vmem:[#allocation2 + $0x200] sm:$0xff]  ;;  %v214_v38 = vld [vmem:[#allocation2 + $0x208] sm:$0xff]  ;;  %v231_v39 = vld [vmem:[#allocation2 + $0x290] sm:$0xff]  ;;  %v2357_v32 = vmov 0.0  }
  0xa3   :  { %1924 = vmatpush3.bf16.msra.mxu0 %v1923_v10  ;;  %v232_v40 = vld [vmem:[#allocation2 + $0x298] sm:$0xff]  ;;  %v143_v41 = vld [vmem:[%s2786_s4] sm:$0xff]  ;;  %v1967_v42 = vpack.c.bf16 %v214_v38, %v213_v37  ;;  %v145_v43 = vld [vmem:[%s2786_s4 + $0x10] sm:$0xff] }
  0xa4   :  { %1926 = vmatprep.subr.bf16.mxu0 %v1925_v14  ;;  %v1969_v44 = vpack.c.bf16 %v232_v40, %v231_v39  ;;  %v215_v45 = vld [vmem:[#allocation2 + $0x210] sm:$0xff]  ;;  %v216_v46 = vld [vmem:[#allocation2 + $0x218] sm:$0xff]  ;;  %v233_v47 = vld [vmem:[#allocation2 + $0x2a0] sm:$0xff] }
  0xa5   :  { %1956 = vmatpush3.bf16.msra.mxu1 %v1955_v13  ;;  %v234_v48 = vld [vmem:[#allocation2 + $0x2a8] sm:$0xff]  ;;  %v1971_v50 = vpack.c.bf16 %v216_v46, %v215_v45  ;;  %v217_v52 = vld [vmem:[#allocation2 + $0x220] sm:$0xff]  ;;  %v235_v54 = vld [vmem:[#allocation2 + $0x2b0] sm:$0xff] }
  0xa6   :  { %1958 = vmatprep.subr.bf16.mxu1 %v1957_v18  ;;  %v148_v49 = vld [vmem:[%s2786_s4 + $0x28] sm:$0xff]  ;;  %v1973_v51 = vpack.c.bf16 %v234_v48, %v233_v47  ;;  %v236_v55 = vld [vmem:[#allocation2 + $0x2b8] sm:$0xff]  ;;  %v219_v58 = vld [vmem:[#allocation2 + $0x230] sm:$0xff] }
  0xa7   :  { %1928 = vmatpush3.bf16.msra.mxu0 %v1927_v24  ;;  %v218_v53 = vld [vmem:[#allocation2 + $0x228] sm:$0xff]  ;;  %v1977_v57 = vpack.c.bf16 %v236_v55, %v235_v54  ;;  %v220_v59 = vld [vmem:[#allocation2 + $0x238] sm:$0xff]  ;;  %v237_v60 = vld [vmem:[#allocation2 + $0x2c0] sm:$0xff] }
  0xa8   :  { %1930 = vmatprep.subr.bf16.mxu0 %v1929_v26  ;;  %v1975_v56 = vpack.c.bf16 %v218_v53, %v217_v52  ;;  %v238_v61 = vld [vmem:[#allocation2 + $0x2c8] sm:$0xff]  ;;  %v1979_v62 = vpack.c.bf16 %v220_v59, %v219_v58  ;;  %v221_v0 = vld [vmem:[#allocation2 + $0x240] sm:$0xff]  ;;  %v239_v2 = vld [vmem:[#allocation2 + $0x2d0] sm:$0xff] }
  0xa9   :  { %1960 = vmatpush3.bf16.msra.mxu1 %v1959_v25  ;;  %v1981_v63 = vpack.c.bf16 %v238_v61, %v237_v60  ;;  %v222_v1 = vld [vmem:[#allocation2 + $0x248] sm:$0xff]  ;;  %v240_v3 = vld [vmem:[#allocation2 + $0x2d8] sm:$0xff]  ;;  %v223_v6 = vld [vmem:[#allocation2 + $0x250] sm:$0xff]  ;;  %v2355_v25 = vmov 0.0|0.0  }
  0xaa   :  { %1962 = vmatprep.subr.bf16.mxu1 %v1961_v30  ;;  %v1983_v4 = vpack.c.bf16 %v222_v1, %v221_v0  ;;  %v1985_v5 = vpack.c.bf16 %v240_v3, %v239_v2  ;;  %v224_v7 = vld [vmem:[#allocation2 + $0x258] sm:$0xff]  ;;  %v241_v8 = vld [vmem:[#allocation2 + $0x2e0] sm:$0xff]  ;;  %v242_v9 = vld [vmem:[#allocation2 + $0x2e8] sm:$0xff] }
  0xab   :  { %1932 = vmatpush3.bf16.msra.mxu0 %v1931_v34  ;;  %v1987_v10 = vpack.c.bf16 %v224_v7, %v223_v6  ;;  %v1989_v11 = vpack.c.bf16 %v242_v9, %v241_v8  ;;  %v225_v12 = vld [vmem:[#allocation2 + $0x260] sm:$0xff]  ;;  %v226_v13 = vld [vmem:[#allocation2 + $0x268] sm:$0xff]  ;;  %v243_v14 = vld [vmem:[#allocation2 + $0x2f0] sm:$0xff] }
  0xac   :  { %1966 = vmatprep.subr.bf16.mxu0 %v1965_v36  ;;  %v244_v15 = vld [vmem:[#allocation2 + $0x2f8] sm:$0xff]  ;;  %v1991_v16 = vpack.c.bf16 %v226_v13, %v225_v12  ;;  %v227_v18 = vld [vmem:[#allocation2 + $0x270] sm:$0xff]  ;;  %v147_v21 = vld [vmem:[%s2786_s4 + $0x20] sm:$0xff] }
  0xad   :  { %1964 = vmatpush3.bf16.msra.mxu1 %v1963_v35  ;;  %v1993_v17 = vpack.c.bf16 %v244_v15, %v243_v14  ;;  %v228_v19 = vld [vmem:[#allocation2 + $0x278] sm:$0xff]  ;;  %v476_v22 = vld [vmem:[%s2787_s21] sm:$0xff]  ;;  %v477_v23 = vld [vmem:[%s2787_s21 + $0x8] sm:$0xff] }
  0xae   :  { %317 = vmatmul.mubr.f32.vlgmr.msra.gmra.mrb[0].mxu0 %v143_v41  ;;  %v1995_v20 = vpack.c.bf16 %v228_v19, %v227_v18  ;;  %v1998_v24 = vpack.c.bf16 %v477_v23, %v476_v22  ;;  %1997 = vmatprep.subr.bf16.mxu1 %v2355_v25  ;;  %v478_v26 = vld [vmem:[%s2787_s21 + $0x10] sm:$0xff]  ;;  %v479_v27 = vld [vmem:[%s2787_s21 + $0x18] sm:$0xff]  ;;  %v480_v29 = vld [vmem:[%s2787_s21 + $0x20] sm:$0xff] }
  0xaf   :  { %1968 = vmatpush3.bf16.msra.mxu0 %v1967_v42  ;;  %456 = vmatprep.mubr.f32.mxu0 %v148_v49  ;;  %v2001_v28 = vpack.c.bf16 %v479_v27, %v478_v26  ;;  %v481_v30 = vld [vmem:[%s2787_s21 + $0x28] sm:$0xff]  ;;  %v482_v33 = vld [vmem:[%s2787_s21 + $0x30] sm:$0xff]  ;;  %v483_v34 = vld [vmem:[%s2787_s21 + $0x38] sm:$0xff] }
  0xb0   :  { %387 = vmatmul.mubr.f32.vlgmr.msra.gmra.mrb[0].mxu1 %v145_v43  ;;  %1970 = vmatprep.subr.bf16.mxu0 %v1969_v44  ;;  %v2004_v31 = vpack.c.bf16 %v481_v30, %v480_v29  ;;  %v2007_v35 = vpack.c.bf16 %v483_v34, %v482_v33  ;;  %v484_v36 = vld [vmem:[%s2787_s21 + $0x40] sm:$0xff]  ;;  %v485_v37 = vld [vmem:[%s2787_s21 + $0x48] sm:$0xff]  ;;  %v486_v39 = vld [vmem:[%s2787_s21 + $0x50] sm:$0xff] }
  0xb1   :  { %1999 = vmatpush3.bf16.msra.mxu1 %v1998_v24  ;;  %1839 = vmatprep.mubr.msk.f32.mxu1 %vm2356_vm0, %v2357_v32  ;;  %v2010_v38 = vpack.c.bf16 %v485_v37, %v484_v36  ;;  %v487_v40 = vld [vmem:[%s2787_s21 + $0x58] sm:$0xff]  ;;  %v488_v42 = vld [vmem:[%s2787_s21 + $0x60] sm:$0xff]  ;;  %v489_v43 = vld [vmem:[%s2787_s21 + $0x68] sm:$0xff] }
  0xb2   :  { %2000 = vmatprep.subr.bf16.mxu1 %v2355_v25  ;;  %v2013_v41 = vpack.c.bf16 %v487_v40, %v486_v39  ;;  %v2016_v44 = vpack.c.bf16 %v489_v43, %v488_v42  ;;  %v490_v45 = vld [vmem:[%s2787_s21 + $0x70] sm:$0xff]  ;;  %v491_v46 = vld [vmem:[%s2787_s21 + $0x78] sm:$0xff]  ;;  %v1636_v49 = vld [vmem:[#allocation5] ss:$0 sm:$0xff]  ;;  %s1624_s21 = sshll.u32 %s2358_s5, 4  ;;  %s1625_s21 = int_to_ptr.vmem [resolvable:$true] %s1624_s21 }
  0xb3   :  { %1972 = vmatpush3.bf16.msra.mxu0 %v1971_v50  ;;  %v2019_v47 = vpack.c.bf16 %v491_v46, %v490_v45  ;;  %v583_v9 = vld [vmem:[%s2788_s24] sm:$0xff]  ;;  %v585_v12 = vld [vmem:[%s2788_s24 + $0x10] sm:$0xf]  ;;  %p2318_p7 = scmp.lt.s32.totalorder %s1625_s21, %s1625_s21 }
  0xb4   :  { %1974 = vmatprep.subr.bf16.mxu0 %v1973_v51  ;;  %v1637_v13 = vld [vmem:[#allocation7] ss:$0 sm:$0xff]  ;;  %v687_v34 = vld [vmem:[%s2753_s7 + $0x10] sm:$0xf] }
  0xb5   :  { %2002 = vmatpush3.bf16.msra.mxu1 %v2001_v28  ;;  %v685_v30 = vld [vmem:[%s2753_s7] sm:$0xff] }
  0xb6   :  { %2003 = vmatprep.subr.bf16.mxu1 %v2355_v25 }
  0xb7   :  { %1976 = vmatpush3.bf16.msra.mxu0 %v1975_v56 }
  0xb8   :  { %1978 = vmatprep.subr.bf16.mxu0 %v1977_v57 }
  0xb9   :  { %2005 = vmatpush3.bf16.msra.mxu1 %v2004_v31  ;;  %v686_v31 = vld [vmem:[%s2753_s7 + $0x8] sm:$0xff] }
  0xba   :  { %2006 = vmatprep.subr.bf16.mxu1 %v2355_v25  ;;  %v2025_v33 = vpack.c.bf16 %v686_v31, %v685_v30 }
  0xbb   :  { %1980 = vmatpush3.bf16.msra.mxu0 %v1979_v62 }
  0xbc   :  { %1982 = vmatprep.subr.bf16.mxu0 %v1981_v63 }
  0xbd   :  { %2008 = vmatpush3.bf16.msra.mxu1 %v2007_v35  ;;  %v1638_v35 = vld [vmem:[#allocation8] ss:$0 sm:$0xff] }
  0xbe   :  { %2009 = vmatprep.subr.bf16.mxu1 %v2355_v25 }
  0xbf   :  { %1984 = vmatpush3.bf16.msra.mxu0 %v1983_v4 }
  0xc0   :  { %1986 = vmatprep.subr.bf16.mxu0 %v1985_v5 }
  0xc1   :  { %2011 = vmatpush3.bf16.msra.mxu1 %v2010_v38 }
  0xc2   :  { %2012 = vmatprep.subr.bf16.mxu1 %v2355_v25 }
  0xc3   :  { %1988 = vmatpush3.bf16.msra.mxu0 %v1987_v10  ;;  %v584_v10 = vld [vmem:[%s2788_s24 + $0x8] sm:$0xff] }
  0xc4   :  { %1990 = vmatprep.subr.bf16.mxu0 %v1989_v11  ;;  %v2022_v11 = vpack.c.bf16 %v584_v10, %v583_v9 }
  0xc5   :  { %2014 = vmatpush3.bf16.msra.mxu1 %v2013_v41 }
  0xc6   :  { %2015 = vmatprep.subr.bf16.mxu1 %v2355_v25 }
  0xc7   :  { %1992 = vmatpush3.bf16.msra.mxu0 %v1991_v16 }
  0xc8   :  { %1994 = vmatprep.subr.bf16.mxu0 %v1993_v17 }
  0xc9   :  { %2017 = vmatpush3.bf16.msra.mxu1 %v2016_v44 }
  0xca   :  { %2018 = vmatprep.subr.bf16.mxu1 %v2355_v25 }
  0xcb   :  { %1996 = vmatpush3.bf16.msra.mxu0 %v1995_v20 }
  0xcc   :  { %2033 = vmatprep.subr.bf16.mxu0 %v2355_v25 }
  0xcd   :  { %2020 = vmatpush3.bf16.msra.mxu1 %v2019_v47 }
  0xce   :  { %457 = vmatmul.mubr.f32.vlgmr.msra.gmra.mrb[2].mxu0 %v147_v21  ;;  %2021 = vmatprep.subr.bf16.mxu1 %v2355_v25 }
  0xcf   :  { %1889 = vmatprep.mubr.msk.f32.mxu0 %vm2356_vm0, %v2357_v32 }
 0x181   :  { %v1691_v48 = vpop.f32.mrb[0].mxu0 }
 0x182   :  { %v1692_v50 = vpop.f32.mrb[1].mxu0 }
 0x183   :  { %v1726_v51 = vpop.f32.mrb[0].mxu1  ;;  %v1693_v52 = vadd.f32 %v1692_v50, %v1691_v48 }
 0x184   :  { %v1727_v53 = vpop.f32.mrb[1].mxu1 }
 0x185   :  { %v1728_v54 = vadd.f32 %v1727_v53, %v1726_v51  ;;  %v319_v55 = vadd.f32 %v1693_v52, %v1636_v49  ;;  %v785_v51 = vld [vmem:[%s2755_s9] sm:$0xff]  ;;  %v786_v52 = vld [vmem:[%s2755_s9 + $0x8] sm:$0xff] }
 0x186   :  { %v2028_v53 = vpack.c.bf16 %v786_v52, %v785_v51 }
 0x187   :  { %v389_v56 = vadd.f32 %v1728_v54, %v319_v55  ;;  %v787_v54 = vld [vmem:[%s2755_s9 + $0x10] sm:$0xf]  ;;  %v1641_v55 = vld [vmem:[#allocation10] ss:$0 sm:$0xff] }
 0x1a1   :  { %v1761_v57 = vpop.f32.mrb[2].mxu0 }
 0x1a2   :  { %v1762_v58 = vpop.f32.mrb[3].mxu0 }
 0x1a3   :  { %v1763_v59 = vadd.f32 %v1762_v58, %v1761_v57 }
 0x1a5   :  { %v459_v60 = vadd.f32 %v1763_v59, %v389_v56 }
 0x1a7   :  { %v463_v61 = vmin.f32 %v459_v60, 20.0  ;;  %vm462_vm2 = vcmp.gt.f32.partialorder %v459_v60, 20.0 }
 0x1a9   :  { %v464_v62 = vmul.f32 1.442695, %v463_v61 }
 0x1ab   :  { %2149 = vpow2.f32 %v464_v62 }
 0x1b5   :  { %v2150_v63 = vpop.eup %2149 }
 0x1b6   :  { %v466_v0 = vadd.f32 1.0, %v2150_v63  ;;  %v469_v1 = vmul.f32 -0.5, %v2150_v63  ;;  %v472_v3 = vand.u32 2147483647, %v2150_v63 }
 0x1b8   :  { %2151 = vlog2.f32 %v466_v0  ;;  %v470_v2 = vadd.f32 1.0, %v469_v1  ;;  %vm473_vm1 = vcmp.lt.f32.partialorder %v472_v3, 0.0004427343 }
 0x1ba   :  { %v471_v6 = vmul.f32 %v2150_v63, %v470_v2 }
 0x1c2   :  { %v2152_v4 = vpop.eup %2151 }
 0x1c3   :  { %v468_v5 = vmul.f32 0.6931472, %v2152_v4 }
 0x1c5   :  { %v474_v7 = vsel %vm473_vm1, %v471_v6, %v468_v5  ;;  %v871_v6 = vld [vmem:[%s2757_s11] sm:$0x1f]  ;;  %s2313_s11 = scalar_lea.vmem %s1625_s21, 768 }
 0x1c6   :  { %v475_v8 = vsel %vm462_vm2, %v459_v60, %v474_v7  ;;  %p2314_p6 = scmp.ne.s32.totalorder %s1625_s21, %s2313_s11  ;;  %p2319_p8 = scmp.lt.s32.totalorder %s2313_s11, %s2313_s11 }
 0x1c7   :  { %1840 = vmatmul.mubr.f32.vlgmr.msra.gmra.mrb[2].mxu1 %v475_v8  ;;  %v1644_v8 = vld [vmem:[%s2756_s10] ss:$0 sm:$0xff] }
 0x1c8   :  { %1848 = vmatprep.mubr.msk.f32.mxu1 %vm2356_vm0, %v2357_v32  ;;  %2023 = vmatpush3.bf16.msra.mxu1 %v2022_v11  ;;  %p2320_p9 = por %p2319_p8, %p2318_p7 }
 0x1c9   :  { %1846 = vmatprep.subr.mxu1 %v2357_v32 }
 0x1ca   :  { %p2321_p10 = pnand %p2320_p9, %p2314_p6 }
 0x1cc   :  { %1847 = vmatpush3.msk.msra.mxu1 %vm597_vm3, %v585_v12  ;;  %v971_v12 = vld [vmem:[%s2759_s13] sm:$0xff] }
 0x1cd   :  { %2024 = vmatprep.subr.bf16.mxu1 %v2355_v25 }
 0x29a   :  { %v565_v14 = vpop.f32.mrb[2].mxu1 }
 0x29b   :  { %v566_v15 = vadd.f32 %v1637_v13, %v565_v14  ;;  %v1841_v16 = vpop.f32.mrb[3].mxu1  ;;  %v972_v13 = vld [vmem:[%s2759_s13 + $0x8] sm:$0xff] }
 0x29c   :  { %v2031_v14 = vpack.c.bf16 %v972_v13, %v971_v12  ;;  %v1647_v16 = vld [vmem:[%s2758_s12] ss:$0 sm:$0xff]  ;;  %v1271_v12 = vld [vmem:[#allocation11] sm:$0xff]  ;;  %v1277_v13 = vld [vmem:[#allocation11 + $0x30] sm:$0xff] }
 0x29d   :  { %v570_v17 = vmin.f32 %v566_v15, 20.0  ;;  %vm569_vm6 = vcmp.gt.f32.partialorder %v566_v15, 20.0 }
 0x29f   :  { %v571_v18 = vmul.f32 1.442695, %v570_v17 }
 0x2a1   :  { %2153 = vpow2.f32 %v571_v18 }
 0x2ab   :  { %v2154_v19 = vpop.eup %2153 }
 0x2ac   :  { %v573_v20 = vadd.f32 1.0, %v2154_v19  ;;  %v576_v21 = vmul.f32 -0.5, %v2154_v19  ;;  %v579_v23 = vand.u32 2147483647, %v2154_v19 }
 0x2ae   :  { %2155 = vlog2.f32 %v573_v20  ;;  %v577_v22 = vadd.f32 1.0, %v576_v21  ;;  %vm580_vm4 = vcmp.lt.f32.partialorder %v579_v23, 0.0004427343 }
 0x2b0   :  { %v578_v27 = vmul.f32 %v2154_v19, %v577_v22 }
 0x2b8   :  { %v2156_v24 = vpop.eup %2155 }
 0x2b9   :  { %v575_v26 = vmul.f32 0.6931472, %v2156_v24 }
 0x2bb   :  { %v581_v28 = vsel %vm580_vm4, %v578_v27, %v575_v26 }
 0x2bc   :  { %v582_v29 = vsel %vm569_vm6, %v566_v15, %v581_v28  ;;  %v973_v15 = vld [vmem:[%s2759_s13 + $0x10] sm:$0xf] }
 0x2bd   :  { %1849 = vmatmul.mubr.msk.f32.vlgmr.msra.gmra.mrb[4].mxu1 %vm593_vm5, %v582_v29 }
 0x2be   :  { %1857 = vmatprep.mubr.msk.f32.mxu1 %vm2356_vm0, %v2357_v32  ;;  %2026 = vmatpush3.bf16.msra.mxu1 %v2025_v33  ;;  %v1071_v33 = vld [vmem:[%s2761_s15] sm:$0xff] }
 0x2bf   :  { %1855 = vmatprep.subr.mxu1 %v2357_v32 }
 0x2c2   :  { %1856 = vmatpush3.msk.msra.mxu1 %vm597_vm3, %v687_v34  ;;  %v1072_v34 = vld [vmem:[%s2761_s15 + $0x8] sm:$0xff] }
 0x2c3   :  { %2027 = vmatprep.subr.bf16.mxu1 %v2355_v25 }
 0x390   :  { %v667_v36 = vpop.f32.mrb[4].mxu1 }
 0x391   :  { %v668_v37 = vadd.f32 %v1638_v35, %v667_v36  ;;  %v1850_v38 = vpop.f32.mrb[5].mxu1  ;;  %v2034_v35 = vpack.c.bf16 %v1072_v34, %v1071_v33  ;;  %v1073_v36 = vld [vmem:[%s2761_s15 + $0x10] sm:$0xf] }
 0x392   :  { %v1296_v34 = vld [vmem:[#allocation11 + $0xc8] sm:$0xff] }
 0x393   :  { %v672_v39 = vmin.f32 %v668_v37, 20.0  ;;  %vm671_vm8 = vcmp.gt.f32.partialorder %v668_v37, 20.0  ;;  %2035 = vmatpush3.bf16.msra.mxu0 %v2034_v35  ;;  %v1302_v35 = vld [vmem:[#allocation11 + $0xf8] sm:$0xff] }
 0x394   :  { %1887 = vmatprep.subr.mxu0 %v2357_v32 }
 0x395   :  { %v673_v40 = vmul.f32 1.442695, %v672_v39 }
 0x397   :  { %2157 = vpow2.f32 %v673_v40  ;;  %1888 = vmatpush3.msk.msra.mxu0 %vm597_vm3, %v1073_v36  ;;  %v1295_v36 = vld [vmem:[#allocation11 + $0xc0] sm:$0xff] }
 0x3a1   :  { %v2158_v41 = vpop.eup %2157 }
 0x3a2   :  { %v675_v42 = vadd.f32 1.0, %v2158_v41  ;;  %v678_v43 = vmul.f32 -0.5, %v2158_v41  ;;  %v681_v45 = vand.u32 2147483647, %v2158_v41 }
 0x3a4   :  { %2159 = vlog2.f32 %v675_v42  ;;  %v679_v44 = vadd.f32 1.0, %v678_v43  ;;  %vm682_vm7 = vcmp.lt.f32.partialorder %v681_v45, 0.0004427343 }
 0x3a6   :  { %v680_v48 = vmul.f32 %v2158_v41, %v679_v44 }
 0x3ae   :  { %v2160_v46 = vpop.eup %2159 }
 0x3af   :  { %v677_v47 = vmul.f32 0.6931472, %v2160_v46 }
 0x3b1   :  { %v683_v49 = vsel %vm682_vm7, %v680_v48, %v677_v47 }
 0x3b2   :  { %v684_v50 = vsel %vm671_vm8, %v668_v37, %v683_v49  ;;  %v1650_v37 = vld [vmem:[%s2760_s14] ss:$0 sm:$0xff] }
 0x3b3   :  { %1858 = vmatmul.mubr.msk.f32.vlgmr.msra.gmra.mrb[6].mxu1 %vm593_vm5, %v684_v50 }
 0x3b4   :  { %1866 = vmatprep.mubr.msk.f32.mxu1 %vm2356_vm0, %v2357_v32  ;;  %2029 = vmatpush3.bf16.msra.mxu1 %v2028_v53  ;;  %v1171_v53 = vld [vmem:[%s2763_s17] sm:$0xff] }
 0x3b5   :  { %1864 = vmatprep.subr.mxu1 %v2357_v32 }
 0x3b8   :  { %1865 = vmatpush3.msk.msra.mxu1 %vm597_vm3, %v787_v54  ;;  %v1172_v54 = vld [vmem:[%s2763_s17 + $0x8] sm:$0xff] }
 0x3b9   :  { %1869 = vmatprep.subr.mxu1 %v2357_v32 }
 0x486   :  { %v767_v56 = vpop.f32.mrb[6].mxu1 }
 0x487   :  { %v768_v57 = vadd.f32 %v1641_v55, %v767_v56  ;;  %v1859_v58 = vpop.f32.mrb[7].mxu1  ;;  %v2037_v55 = vpack.c.bf16 %v1172_v54, %v1171_v53  ;;  %v1173_v56 = vld [vmem:[%s2763_s17 + $0x10] sm:$0xf]  ;;  %v1309_v54 = vld [vmem:[#allocation11 + $0x130] sm:$0xff] }
 0x488   :  { %v1316_v53 = vld [vmem:[#allocation11 + $0x168] sm:$0xff] }
 0x489   :  { %v772_v59 = vmin.f32 %v768_v57, 20.0  ;;  %vm771_vm10 = vcmp.gt.f32.partialorder %v768_v57, 20.0 }
 0x48b   :  { %v773_v60 = vmul.f32 1.442695, %v772_v59 }
 0x48d   :  { %2161 = vpow2.f32 %v773_v60 }
 0x497   :  { %v2162_v61 = vpop.eup %2161 }
 0x498   :  { %v775_v62 = vadd.f32 1.0, %v2162_v61  ;;  %v778_v63 = vmul.f32 -0.5, %v2162_v61  ;;  %v781_v1 = vand.u32 2147483647, %v2162_v61 }
 0x49a   :  { %2163 = vlog2.f32 %v775_v62  ;;  %v779_v0 = vadd.f32 1.0, %v778_v63  ;;  %vm782_vm9 = vcmp.lt.f32.partialorder %v781_v1, 0.0004427343 }
 0x49c   :  { %v780_v4 = vmul.f32 %v2162_v61, %v779_v0 }
 0x4a4   :  { %v2164_v2 = vpop.eup %2163 }
 0x4a5   :  { %v777_v3 = vmul.f32 0.6931472, %v2164_v2 }
 0x4a7   :  { %v783_v5 = vsel %vm782_vm9, %v780_v4, %v777_v3 }
 0x4a8   :  { %v784_v7 = vsel %vm771_vm10, %v768_v57, %v783_v5  ;;  %v1653_v57 = vld [vmem:[%s2762_s16] ss:$0 sm:$0xff] }
 0x4a9   :  { %1867 = vmatmul.mubr.msk.f32.vlgmr.msra.gmra.mrb[8].mxu1 %vm593_vm5, %v784_v7 }
 0x4aa   :  { %1870 = vmatpush3.msk.msra.mxu1 %vm883_vm11, %v871_v6  ;;  %1871 = vmatprep.mubr.msk.f32.mxu1 %vm2356_vm0, %v2357_v32 }
 0x4ab   :  { %2030 = vmatprep.subr.bf16.mxu1 %v2355_v25 }
 0x57c   :  { %v867_v9 = vpop.f32.mrb[8].mxu1 }
 0x57d   :  { %v868_v10 = vadd.f32 %v1644_v8, %v867_v9  ;;  %v1868_v11 = vpop.f32.mrb[9].mxu1  ;;  %v1272_v9 = vld [vmem:[#allocation11 + $0x8] sm:$0xff] }
 0x57f   :  { %1872 = vmatmul.mubr.msk.f32.vlgmr.msra.gmra.mrb[10].mxu1 %vm879_vm12, %v868_v10  ;;  %v1278_v10 = vld [vmem:[#allocation11 + $0x38] sm:$0xff] }
 0x580   :  { %1880 = vmatprep.mubr.msk.f32.mxu1 %vm2356_vm0, %v2357_v32  ;;  %2032 = vmatpush3.bf16.msra.mxu1 %v2031_v14  ;;  %v2039_v11 = vpack.c.bf16 %v1278_v10, %v1272_v9  ;;  %v1274_v14 = vld [vmem:[#allocation11 + $0x18] sm:$0xff]  ;;  %v1337_v9 = vld [vmem:[#allocation11 + $0x210] sm:$0xff] }
 0x581   :  { %1878 = vmatprep.subr.mxu1 %v2357_v32  ;;  %v1334_v10 = vld [vmem:[#allocation11 + $0x1f8] sm:$0xff] }
 0x582   :  { %2040 = vmatprep.subr.bf16.mxu0 %v2039_v11  ;;  %v1340_v11 = vld [vmem:[#allocation11 + $0x228] sm:$0xff] }
 0x584   :  { %1879 = vmatpush3.msk.msra.mxu1 %vm597_vm3, %v973_v15  ;;  %v2041_v15 = vpack.c.bf16 %v1277_v13, %v1271_v12  ;;  %v1344_v13 = vld [vmem:[#allocation11 + $0x248] sm:$0xff] }
 0x585   :  { %2036 = vmatprep.subr.bf16.mxu1 %v2355_v25 }
 0x652   :  { %v953_v17 = vpop.f32.mrb[10].mxu1 }
 0x653   :  { %v954_v18 = vadd.f32 %v1647_v16, %v953_v17  ;;  %v1873_v19 = vpop.f32.mrb[11].mxu1  ;;  %v1280_v16 = vld [vmem:[#allocation11 + $0x48] sm:$0xff]  ;;  %v1273_v17 = vld [vmem:[#allocation11 + $0x10] sm:$0xff] }
 0x654   :  { %v2071_v19 = vpack.c.bf16 %v1280_v16, %v1274_v14  ;;  %v2091_v14 = vpack.c.bf16 %v1340_v11, %v1334_v10  ;;  %v1339_v16 = vld [vmem:[#allocation11 + $0x220] sm:$0xff]  ;;  %v1305_v11 = vld [vmem:[#allocation11 + $0x110] sm:$0xff] }
 0x655   :  { %v958_v20 = vmin.f32 %v954_v18, 20.0  ;;  %vm957_vm14 = vcmp.gt.f32.partialorder %v954_v18, 20.0  ;;  %v1299_v10 = vld [vmem:[#allocation11 + $0xe0] sm:$0xff] }
 0x657   :  { %v959_v21 = vmul.f32 1.442695, %v958_v20 }
 0x659   :  { %2165 = vpow2.f32 %v959_v21  ;;  %v1284_v21 = vld [vmem:[#allocation11 + $0x68] sm:$0xff] }
 0x663   :  { %v2166_v22 = vpop.eup %2165 }
 0x664   :  { %v961_v23 = vadd.f32 1.0, %v2166_v22  ;;  %v964_v24 = vmul.f32 -0.5, %v2166_v22  ;;  %v967_v27 = vand.u32 2147483647, %v2166_v22 }
 0x666   :  { %2167 = vlog2.f32 %v961_v23  ;;  %v965_v26 = vadd.f32 1.0, %v964_v24  ;;  %vm968_vm13 = vcmp.lt.f32.partialorder %v967_v27, 0.0004427343  ;;  %v1283_v24 = vld [vmem:[#allocation11 + $0x60] sm:$0xff]  ;;  %v1286_v27 = vld [vmem:[#allocation11 + $0x78] sm:$0xff] }
 0x668   :  { %v966_v30 = vmul.f32 %v2166_v22, %v965_v26  ;;  %v1290_v22 = vld [vmem:[#allocation11 + $0x98] sm:$0xff]  ;;  %v1289_v26 = vld [vmem:[#allocation11 + $0x90] sm:$0xff] }
 0x669   :  { %v2043_v23 = vpack.c.bf16 %v1290_v22, %v1284_v21  ;;  %v1343_v22 = vld [vmem:[#allocation11 + $0x240] sm:$0xff] }
 0x670   :  { %v2168_v28 = vpop.eup %2167 }
 0x671   :  { %v963_v29 = vmul.f32 0.6931472, %v2168_v28  ;;  %v2045_v28 = vpack.c.bf16 %v1289_v26, %v1283_v24  ;;  %v1356_v26 = vld [vmem:[#allocation11 + $0x2a8] sm:$0xff] }
 0x673   :  { %v969_v25 = vsel %vm968_vm13, %v966_v30, %v963_v29  ;;  %v1292_v29 = vld [vmem:[#allocation11 + $0xa8] sm:$0xff]  ;;  %v1285_v30 = vld [vmem:[#allocation11 + $0x70] sm:$0xff] }
 0x674   :  { %v970_v31 = vsel %vm957_vm14, %v954_v18, %v969_v25  ;;  %v1279_v18 = vld [vmem:[#allocation11 + $0x40] sm:$0xff] }
 0x675   :  { %1881 = vmatmul.mubr.msk.f32.vlgmr.msra.gmra.mrb[12].mxu1 %vm593_vm5, %v970_v31  ;;  %v2073_v20 = vpack.c.bf16 %v1279_v18, %v1273_v17  ;;  %v1291_v25 = vld [vmem:[#allocation11 + $0xa0] sm:$0xff]  ;;  %v2075_v31 = vpack.c.bf16 %v1292_v29, %v1286_v27  ;;  %v1350_v17 = vld [vmem:[#allocation11 + $0x278] sm:$0xff]  ;;  %v1345_v29 = vld [vmem:[#allocation11 + $0x250] sm:$0xff] }
 0x676   :  { %1898 = vmatprep.mubr.msk.f32.mxu1 %vm2356_vm0, %v2357_v32  ;;  %2038 = vmatpush3.bf16.msra.mxu1 %v2037_v55  ;;  %v2077_v33 = vpack.c.bf16 %v1291_v25, %v1285_v30  ;;  %v2063_v21 = vpack.c.bf16 %v1350_v17, %v1344_v13  ;;  %v1362_v27 = vld [vmem:[#allocation11 + $0x2d8] sm:$0xff]  ;;  %v1351_v30 = vld [vmem:[#allocation11 + $0x280] sm:$0xff]  ;;  %v1317_v17 = vld [vmem:[#allocation11 + $0x170] sm:$0xff] }
 0x677   :  { %1896 = vmatprep.subr.mxu1 %v2357_v32  ;;  %v1318_v13 = vld [vmem:[#allocation11 + $0x178] sm:$0xff] }
 0x67a   :  { %1897 = vmatpush3.msk.msra.mxu1 %vm597_vm3, %v1173_v56  ;;  %v1315_v56 = vld [vmem:[#allocation11 + $0x160] sm:$0xff] }
 0x67b   :  { %2072 = vmatprep.subr.bf16.mxu1 %v2071_v19  ;;  %v1346_v19 = vld [vmem:[#allocation11 + $0x258] sm:$0xff] }
 0x748   :  { %v1053_v38 = vpop.f32.mrb[12].mxu1 }
 0x749   :  { %v1054_v39 = vadd.f32 %v1650_v37, %v1053_v38  ;;  %v1882_v40 = vpop.f32.mrb[13].mxu1  ;;  %v2047_v37 = vpack.c.bf16 %v1302_v35, %v1296_v34  ;;  %v1301_v38 = vld [vmem:[#allocation11 + $0xf0] sm:$0xff]  ;;  %v2067_v34 = vpack.c.bf16 %v1362_v27, %v1356_v26  ;;  %v1355_v35 = vld [vmem:[#allocation11 + $0x2a0] sm:$0xff] }
 0x74a   :  { %v1304_v40 = vld [vmem:[#allocation11 + $0x108] sm:$0xff] }
 0x74b   :  { %v1058_v41 = vmin.f32 %v1054_v39, 20.0  ;;  %vm1057_vm0 = vcmp.gt.f32.partialorder %v1054_v39, 20.0 }
 0x74d   :  { %v1059_v42 = vmul.f32 1.442695, %v1058_v41  ;;  %v2049_v41 = vpack.c.bf16 %v1301_v38, %v1295_v36  ;;  %v1361_v36 = vld [vmem:[#allocation11 + $0x2d0] sm:$0xff]  ;;  %v1276_v38 = vld [vmem:[#allocation11 + $0x28] sm:$0xff] }
 0x74f   :  { %2169 = vpow2.f32 %v1059_v42 }
 0x759   :  { %v2170_v43 = vpop.eup %2169 }
 0x75a   :  { %v1061_v44 = vadd.f32 1.0, %v2170_v43  ;;  %v1064_v45 = vmul.f32 -0.5, %v2170_v43  ;;  %v1067_v47 = vand.u32 2147483647, %v2170_v43 }
 0x75c   :  { %2171 = vlog2.f32 %v1061_v44  ;;  %v1065_v46 = vadd.f32 1.0, %v1064_v45  ;;  %vm1068_vm15 = vcmp.lt.f32.partialorder %v1067_v47, 0.0004427343  ;;  %v1303_v44 = vld [vmem:[#allocation11 + $0x100] sm:$0xff]  ;;  %v1308_v45 = vld [vmem:[#allocation11 + $0x128] sm:$0xff]  ;;  %v1314_v47 = vld [vmem:[#allocation11 + $0x158] sm:$0xff] }
 0x75e   :  { %v1066_v50 = vmul.f32 %v2170_v43, %v1065_v46  ;;  %v1297_v43 = vld [vmem:[#allocation11 + $0xd0] sm:$0xff] }
 0x75f   :  { %v2081_v46 = vpack.c.bf16 %v1303_v44, %v1297_v43  ;;  %v2069_v43 = vpack.c.bf16 %v1361_v36, %v1355_v35  ;;  %v1353_v35 = vld [vmem:[#allocation11 + $0x290] sm:$0xff]  ;;  %v1360_v36 = vld [vmem:[#allocation11 + $0x2c8] sm:$0xff] }
 0x766   :  { %v2172_v48 = vpop.eup %2171 }
 0x767   :  { %v1063_v49 = vmul.f32 0.6931472, %v2172_v48  ;;  %v1307_v48 = vld [vmem:[#allocation11 + $0x120] sm:$0xff] }
 0x769   :  { %v1069_v51 = vsel %vm1068_vm15, %v1066_v50, %v1063_v49  ;;  %v1313_v49 = vld [vmem:[#allocation11 + $0x150] sm:$0xff]  ;;  %v2051_v50 = vpack.c.bf16 %v1314_v47, %v1308_v45 }
 0x76a   :  { %v1070_v52 = vsel %vm1057_vm0, %v1054_v39, %v1069_v51  ;;  %v1298_v39 = vld [vmem:[#allocation11 + $0xd8] sm:$0xff]  ;;  %v2053_v51 = vpack.c.bf16 %v1313_v49, %v1307_v48 }
 0x76b   :  { %1890 = vmatmul.mubr.msk.f32.vlgmr.msra.gmra.mrb[4].mxu0 %vm593_vm5, %v1070_v52  ;;  %v2079_v42 = vpack.c.bf16 %v1304_v40, %v1298_v39  ;;  %v1310_v52 = vld [vmem:[#allocation11 + $0x138] sm:$0xff] }
 0x76c   :  { %1463 = vmatprep.mubr.f32.mxu0 %v2357_v32  ;;  %2042 = vmatpush1.bf16.msra.mxu0 %v2041_v15  ;;  %v2083_v55 = vpack.c.bf16 %v1316_v53, %v1310_v52  ;;  %v1333_v15 = vld [vmem:[#allocation11 + $0x1f0] sm:$0xff]  ;;  %v1282_v39 = vld [vmem:[#allocation11 + $0x58] sm:$0xff] }
 0x76d   :  { %2044 = vmatprep.subr.bf16.mxu0 %v2043_v23  ;;  %v1349_v23 = vld [vmem:[#allocation11 + $0x270] sm:$0xff]  ;;  %v2093_v24 = vpack.c.bf16 %v1339_v16, %v1333_v15  ;;  %v2103_v44 = vpack.c.bf16 %v1282_v39, %v1276_v38  ;;  %v1311_v16 = vld [vmem:[#allocation11 + $0x140] sm:$0xff] }
 0x76e   :  { %v2065_v25 = vpack.c.bf16 %v1349_v23, %v1343_v22  ;;  %v1323_v22 = vld [vmem:[#allocation11 + $0x1a0] sm:$0xff]  ;;  %v1336_v23 = vld [vmem:[#allocation11 + $0x208] sm:$0xff] }
 0x770   :  { %2046 = vmatpush1.bf16.msra.mxu0 %v2045_v28 }
 0x771   :  { %2048 = vmatprep.subr.bf16.mxu0 %v2047_v37  ;;  %v2097_v37 = vpack.c.bf16 %v1351_v30, %v1345_v29  ;;  %v1341_v29 = vld [vmem:[#allocation11 + $0x230] sm:$0xff]  ;;  %v1348_v30 = vld [vmem:[#allocation11 + $0x268] sm:$0xff] }
 0x774   :  { %2050 = vmatpush1.bf16.msra.mxu0 %v2049_v41  ;;  %v1357_v41 = vld [vmem:[#allocation11 + $0x2b0] sm:$0xff] }
 0x775   :  { %2052 = vmatprep.subr.bf16.mxu0 %v2051_v50 }
 0x778   :  { %2054 = vmatpush1.bf16.msra.mxu0 %v2053_v51 }
 0x83e   :  { %v1153_v58 = vpop.f32.mrb[4].mxu0 }
 0x83f   :  { %v1154_v59 = vadd.f32 %v1653_v57, %v1153_v58  ;;  %v1891_v60 = vpop.f32.mrb[5].mxu0  ;;  %v1320_v57 = vld [vmem:[#allocation11 + $0x188] sm:$0xff]  ;;  %v1326_v58 = vld [vmem:[#allocation11 + $0x1b8] sm:$0xff] }
 0x840   :  { %v2055_v60 = vpack.c.bf16 %v1326_v58, %v1320_v57  ;;  %v1275_v57 = vld [vmem:[#allocation11 + $0x20] sm:$0xff]  ;;  %v1281_v58 = vld [vmem:[#allocation11 + $0x50] sm:$0xff] }
 0x841   :  { %v1158_v61 = vmin.f32 %v1154_v59, 20.0  ;;  %vm1157_vm2 = vcmp.gt.f32.partialorder %v1154_v59, 20.0 }
 0x842   :  { %2056 = vmatprep.subr.bf16.mxu0 %v2055_v60  ;;  %v1288_v60 = vld [vmem:[#allocation11 + $0x88] sm:$0xff] }
 0x843   :  { %v1159_v62 = vmul.f32 1.442695, %v1158_v61  ;;  %v1319_v61 = vld [vmem:[#allocation11 + $0x180] sm:$0xff] }
 0x845   :  { %2173 = vpow2.f32 %v1159_v62  ;;  %v1325_v62 = vld [vmem:[#allocation11 + $0x1b0] sm:$0xff] }
 0x84f   :  { %v2174_v63 = vpop.eup %2173 }
 0x850   :  { %v1161_v0 = vadd.f32 1.0, %v2174_v63  ;;  %v1164_v1 = vmul.f32 -0.5, %v2174_v63  ;;  %v1167_v3 = vand.u32 2147483647, %v2174_v63 }
 0x852   :  { %2175 = vlog2.f32 %v1161_v0  ;;  %v1165_v2 = vadd.f32 1.0, %v1164_v1  ;;  %vm1168_vm1 = vcmp.lt.f32.partialorder %v1167_v3, 0.0004427343  ;;  %v1328_v0 = vld [vmem:[#allocation11 + $0x1c8] sm:$0xff]  ;;  %v1321_v1 = vld [vmem:[#allocation11 + $0x190] sm:$0xff]  ;;  %v2057_v3 = vpack.c.bf16 %v1325_v62, %v1319_v61  ;;  %v1294_v61 = vld [vmem:[#allocation11 + $0xb8] sm:$0xff] }
 0x854   :  { %v1166_v6 = vmul.f32 %v2174_v63, %v1165_v2  ;;  %v1322_v63 = vld [vmem:[#allocation11 + $0x198] sm:$0xff]  ;;  %v1327_v2 = vld [vmem:[#allocation11 + $0x1c0] sm:$0xff]  ;;  %2058 = vmatpush1.bf16.msra.mxu0 %v2057_v3 }
 0x855   :  { %v2089_v12 = vpack.c.bf16 %v1327_v2, %v1321_v1  ;;  %v2107_v2 = vpack.c.bf16 %v1294_v61, %v1288_v60  ;;  %v1287_v3 = vld [vmem:[#allocation11 + $0x80] sm:$0xff] }
 0x85c   :  { %v2176_v4 = vpop.eup %2175 }
 0x85d   :  { %v1163_v5 = vmul.f32 0.6931472, %v2176_v4  ;;  %v2087_v4 = vpack.c.bf16 %v1328_v0, %v1322_v63  ;;  %v2105_v0 = vpack.c.bf16 %v1281_v58, %v1275_v57 }
 0x85f   :  { %v1169_v7 = vsel %vm1168_vm1, %v1166_v6, %v1163_v5  ;;  %v1332_v5 = vld [vmem:[#allocation11 + $0x1e8] sm:$0xff]  ;;  %v1338_v6 = vld [vmem:[#allocation11 + $0x218] sm:$0xff] }
 0x860   :  { %v1170_v8 = vsel %vm1157_vm2, %v1154_v59, %v1169_v7  ;;  %v2085_v59 = vpack.c.bf16 %v1315_v56, %v1309_v54  ;;  %v1331_v7 = vld [vmem:[#allocation11 + $0x1e0] sm:$0xff] }
 0x861   :  { %1899 = vmatmul.mubr.msk.f32.vlgmr.msra.gmra.mrb[14].mxu1 %vm593_vm5, %v1170_v8  ;;  %v2059_v8 = vpack.c.bf16 %v1338_v6, %v1332_v5  ;;  %v2061_v18 = vpack.c.bf16 %v1337_v9, %v1331_v7  ;;  %v1300_v6 = vld [vmem:[#allocation11 + $0xe8] sm:$0xff]  ;;  %v1306_v7 = vld [vmem:[#allocation11 + $0x118] sm:$0xff] }
 0x862   :  { %1534 = vmatprep.mubr.f32.mxu1 %v2357_v32  ;;  %2074 = vmatpush1.bf16.msra.mxu1 %v2073_v20  ;;  %v1352_v20 = vld [vmem:[#allocation11 + $0x288] sm:$0xff]  ;;  %v2111_v9 = vpack.c.bf16 %v1306_v7, %v1300_v6 }
 0x863   :  { %2076 = vmatprep.subr.bf16.mxu1 %v2075_v31  ;;  %2060 = vmatprep.subr.bf16.mxu0 %v2059_v8  ;;  %v2095_v28 = vpack.c.bf16 %v1352_v20, %v1346_v19  ;;  %v1358_v31 = vld [vmem:[#allocation11 + $0x2b8] sm:$0xff]  ;;  %v2117_v20 = vpack.c.bf16 %v1317_v17, %v1311_v16 }
 0x864   :  { %2062 = vmatpush1.bf16.msra.mxu0 %v2061_v18  ;;  %v1324_v18 = vld [vmem:[#allocation11 + $0x1a8] sm:$0xff]  ;;  %v1330_v19 = vld [vmem:[#allocation11 + $0x1d8] sm:$0xff] }
 0x865   :  { %2064 = vmatprep.subr.bf16.mxu0 %v2063_v21  ;;  %v2119_v21 = vpack.c.bf16 %v1330_v19, %v1324_v18 }
 0x866   :  { %2078 = vmatpush1.bf16.msra.mxu1 %v2077_v33  ;;  %v1364_v33 = vld [vmem:[#allocation11 + $0x2e8] sm:$0xff] }
 0x867   :  { %2080 = vmatprep.subr.bf16.mxu1 %v2079_v42  ;;  %v2099_v40 = vpack.c.bf16 %v1364_v33, %v1358_v31  ;;  %v1363_v42 = vld [vmem:[#allocation11 + $0x2e0] sm:$0xff] }
 0x868   :  { %2066 = vmatpush1.bf16.msra.mxu0 %v2065_v25  ;;  %v2101_v45 = vpack.c.bf16 %v1363_v42, %v1357_v41  ;;  %v1354_v25 = vld [vmem:[#allocation11 + $0x298] sm:$0xff]  ;;  %v1365_v41 = vld [vmem:[#allocation11 + $0x2f0] sm:$0xff] }
 0x869   :  { %2068 = vmatprep.subr.bf16.mxu0 %v2067_v34  ;;  %v2127_v33 = vpack.c.bf16 %v1354_v25, %v1348_v30  ;;  %v1347_v34 = vld [vmem:[#allocation11 + $0x260] sm:$0xff] }
 0x86a   :  { %2082 = vmatpush1.bf16.msra.mxu1 %v2081_v46  ;;  %v1656_v46 = vld [vmem:[%s2764_s18] ss:$0 sm:$0xff]  ;;  %v2129_v38 = vpack.c.bf16 %v1353_v35, %v1347_v34 }
 0x86b   :  { %2084 = vmatprep.subr.bf16.mxu1 %v2083_v55 }
 0x86c   :  { %2070 = vmatpush1.bf16.msra.mxu0 %v2069_v43  ;;  %v1369_v43 = vlaneseq }
 0x86d   :  { %2104 = vmatprep.subr.bf16.mxu0 %v2103_v44 }
 0x86e   :  { %2086 = vmatpush1.bf16.msra.mxu1 %v2085_v59  ;;  %v1370_v44 = vshrl.u32 %v1369_v43, 7 }
 0x86f   :  { %2088 = vmatprep.subr.bf16.mxu1 %v2087_v4  ;;  %v1293_v4 = vld [vmem:[#allocation11 + $0xb0] sm:$0xff] }
 0x870   :  { %v2109_v8 = vpack.c.bf16 %v1293_v4, %v1287_v3 }
 0x872   :  { %2090 = vmatpush1.bf16.msra.mxu1 %v2089_v12  ;;  %v1312_v12 = vld [vmem:[#allocation11 + $0x148] sm:$0xff] }
 0x873   :  { %2092 = vmatprep.subr.bf16.mxu1 %v2091_v14  ;;  %v2113_v14 = vpack.c.bf16 %v1305_v11, %v1299_v10  ;;  %v2115_v15 = vpack.c.bf16 %v1318_v13, %v1312_v12 }
 0x876   :  { %2094 = vmatpush1.bf16.msra.mxu1 %v2093_v24  ;;  %v1342_v24 = vld [vmem:[#allocation11 + $0x238] sm:$0xff] }
 0x877   :  { %2096 = vmatprep.subr.bf16.mxu1 %v2095_v28  ;;  %v2123_v27 = vpack.c.bf16 %v1342_v24, %v1336_v23  ;;  %v1335_v28 = vld [vmem:[#allocation11 + $0x200] sm:$0xff] }
 0x878   :  { %v2125_v31 = vpack.c.bf16 %v1341_v29, %v1335_v28 }
 0x87a   :  { %2098 = vmatpush1.bf16.msra.mxu1 %v2097_v37  ;;  %v1366_v37 = vld [vmem:[#allocation11 + $0x2f8] sm:$0xff] }
 0x87b   :  { %2100 = vmatprep.subr.bf16.mxu1 %v2099_v40  ;;  %v2131_v39 = vpack.c.bf16 %v1366_v37, %v1360_v36  ;;  %v1359_v40 = vld [vmem:[#allocation11 + $0x2c0] sm:$0xff] }
 0x87c   :  { %v2133_v42 = vpack.c.bf16 %v1365_v41, %v1359_v40 }
 0x87e   :  { %2102 = vmatpush1.bf16.msra.mxu1 %v2101_v45  ;;  %v1371_v45 = vsub.s32 0, %v1370_v44 }
 0x934   :  { %v1253_v47 = vpop.f32.mrb[14].mxu1 }
 0x935   :  { %v1254_v48 = vadd.f32 %v1656_v46, %v1253_v47  ;;  %v1900_v49 = vpop.f32.mrb[15].mxu1  ;;  %v1379_v46 = vsub.s32 2, %v1370_v44  ;;  %v1367_v47 = vld [vmem:[%s2789_s0] sm:$0x3f] }
 0x936   :  { %v1383_v49 = vsub.s32 3, %v1370_v44 }
 0x937   :  { %v1258_v50 = vmin.f32 %v1254_v48, 20.0  ;;  %vm1257_vm4 = vcmp.gt.f32.partialorder %v1254_v48, 20.0 }
 0x939   :  { %v1259_v51 = vmul.f32 1.442695, %v1258_v50  ;;  %v1372_v50 = vrot.slane %v1367_v47, %v1371_v45 }
 0x93b   :  { %2177 = vpow2.f32 %v1259_v51  ;;  %v1380_v51 = vrot.slane %v1367_v47, %v1379_v46 }
 0x945   :  { %v2178_v52 = vpop.eup %2177 }
 0x946   :  { %v1261_v53 = vadd.f32 1.0, %v2178_v52  ;;  %v1264_v54 = vmul.f32 -0.5, %v2178_v52  ;;  %v1267_v56 = vand.u32 2147483647, %v2178_v52 }
 0x948   :  { %2179 = vlog2.f32 %v1261_v53  ;;  %v1265_v55 = vadd.f32 1.0, %v1264_v54  ;;  %vm1268_vm3 = vcmp.lt.f32.partialorder %v1267_v56, 0.0004427343  ;;  %v1384_v53 = vrot.slane %v1367_v47, %v1383_v49 }
 0x94a   :  { %v1266_v63 = vmul.f32 %v2178_v52, %v1265_v55 }
 0x952   :  { %v2180_v59 = vpop.eup %2179 }
 0x953   :  { %v1263_v62 = vmul.f32 0.6931472, %v2180_v59 }
 0x955   :  { %v1269_v1 = vsel %vm1268_vm3, %v1266_v63, %v1263_v62  ;;  %v1387_v62 = vsub.s32 4, %v1370_v44  ;;  %v1391_v63 = vsub.s32 5, %v1370_v44 }
 0x956   :  { %v1270_v5 = vsel %vm1257_vm4, %v1254_v48, %v1269_v1  ;;  %v1375_v48 = vsub.s32 1, %v1370_v44 }
 0x957   :  { %1464 = vmatmul.mubr.f32.vlgmr.msra.gmra.mrb[6].mxu0 %v1270_v5  ;;  %1535 = vmatmul.mubr.f32.vlgmr.msra.gmra.mrb[16].mxu1 %v1270_v5  ;;  %v1392_v1 = vrot.slane %v1367_v47, %v1391_v63 }
 0x958   :  { %2106 = vmatpush1.bf16.msra.mxu0 %v2105_v0  ;;  %1605 = vmatprep.mubr.f32.mxu0 %v2357_v32  ;;  %v1329_v32 = vld [vmem:[#allocation11 + $0x1d0] sm:$0xff]  ;;  %v1376_v52 = vrot.slane %v1367_v47, %v1375_v48  ;;  %v1388_v0 = vrot.slane %v1367_v47, %v1387_v62 }
 0x959   :  { %2108 = vmatprep.subr.bf16.mxu0 %v2107_v2  ;;  %v2121_v26 = vpack.c.bf16 %v1329_v32, %v1323_v22 }
 0x95c   :  { %2110 = vmatpush1.bf16.msra.mxu0 %v2109_v8 }
 0x95d   :  { %2112 = vmatprep.subr.bf16.mxu0 %v2111_v9 }
 0x960   :  { %2114 = vmatpush1.bf16.msra.mxu0 %v2113_v14 }
 0x961   :  { %2116 = vmatprep.subr.bf16.mxu0 %v2115_v15 }
 0x964   :  { %2118 = vmatpush1.bf16.msra.mxu0 %v2117_v20 }
 0x965   :  { %2120 = vmatprep.subr.bf16.mxu0 %v2119_v21 }
 0x968   :  { %2122 = vmatpush1.bf16.msra.mxu0 %v2121_v26 }
 0x969   :  { %2124 = vmatprep.subr.bf16.mxu0 %v2123_v27 }
 0x96c   :  { %2126 = vmatpush1.bf16.msra.mxu0 %v2125_v31 }
 0x96d   :  { %2128 = vmatprep.subr.bf16.mxu0 %v2127_v33 }
 0x970   :  { %2130 = vmatpush1.bf16.msra.mxu0 %v2129_v38 }
 0x971   :  { %2132 = vmatprep.subr.bf16.mxu0 %v2131_v39 }
 0x974   :  { %2134 = vmatpush1.bf16.msra.mxu0 %v2133_v42 }
 0x977   :  { %1606 = vmatmul.mubr.f32.vlgmr.msra.gmra.mrb[8].mxu0 %v1270_v5 }
 0xa2a   :  { %v1465_v54 = vpop.f32.mrb[6].mxu0  ;;  %v1536_v55 = vpop.f32.mrb[16].mxu1 }
 0xa2b   :  { %v1466_v56 = vadd.f32 %v1465_v54, %v1372_v50  ;;  %v1537_v57 = vadd.f32 %v1536_v55, %v1380_v51  ;;  %v1467_v58 = vpop.f32.mrb[7].mxu0  ;;  %v1538_v59 = vpop.f32.mrb[17].mxu1 }
 0xa2c   :  { %v1468_v60 = vadd.f32 %v1467_v58, %v1376_v52  ;;  %v1539_v61 = vadd.f32 %v1538_v59, %v1384_v53 }
 0xa2d   :  { %1612 = vst [vmem:[#allocation13] sm:$0xff] %v1466_v56  ;;  %1614 = vst [vmem:[#allocation13 + $0x10] sm:$0xff] %v1537_v57 }
 0xa2e   :  { %1613 = vst [vmem:[#allocation13 + $0x8] sm:$0xff] %v1468_v60  ;;  %1615 = vst [vmem:[#allocation13 + $0x18] sm:$0xff] %v1539_v61 }
 0xa4a   :  { %v1607_v2 = vpop.f32.mrb[8].mxu0 }
 0xa4b   :  { %v1608_v3 = vadd.f32 %v1607_v2, %v1388_v0  ;;  %v1609_v4 = vpop.f32.mrb[9].mxu0 }
 0xa4c   :  { %v1610_v5 = vadd.f32 %v1609_v4, %v1392_v1 }
 0xa4d   :  { %1616 = vst [vmem:[#allocation13 + $0x20] sm:$0xff] %v1608_v3 }
 0xa4e   :  { %1617 = vst [vmem:[#allocation13 + $0x28] sm:$0xff] %v1610_v5 }
 0xa4f   :  { %2324 = shalt.err (!%p2321_p10)
}
 0xa50   :  { %s2790_s3 = sld [smem:[#allocation26_spill]] }
 0xa56   :  { %s2325_s10 = scalar_lea.hbm %s2790_s3, 768 }
 0xa57   :  { %p2326_p11 = scmp.ne.s32.totalorder %s2790_s3, %s2325_s10  ;;  %p2329_p12 = scmp.lt.u32.totalorder %s2325_s10, %s2790_s3 }
 0xa59   :  { %p2331_p13 = pnand %p2329_p12, %p2326_p11 }
 0xa5b   :  { %2334 = shalt.err (!%p2331_p13)
}
 0xa5c   :  { %1627 = dma.vmem_to_hbm [thread:$0]  %s1625_s21, 768, %s2790_s3, [#allocation4]  }
 0xa5d   :  { %2343 = dma.done.wait [#allocation4], 768  }
 0xa5e   :  { %2344 = vsyncadd [#allocation4], 4294966528 }
 0xa5f   :  { %1631 = vsyncpa [#allocation3], 1 }
 0xa60   :  { %1632 = vsyncpa [#allocation6], 1 }
 0xa61   :  { %1633 = vsyncpa [#allocation9], 1 }
 0xa62   :  { %1634 = vsyncpa [#allocation12], 1 }
 0xa63   :  { %1635 = vsyncpa [#allocation4], 1 }

</bundles_post_ra>
